<compile_context>
chip_gen: v7x
topology: tpu7x:2x2x1
jax: 0.10.0
libtpu: 0.0.40
codegen_flags: <defaults>
</compile_context>

<pallas_src>
import functools

import jax
import jax.numpy as jnp
from jax.experimental import pallas as pl
from jax.experimental.pallas import tpu as pltpu


def _round_up(x, n):
    return ((x + n - 1) // n) * n


def _num_tensorcores():
    """Heuristic: v7x has 2 TensorCores/chip, earlier generations have 1."""
    try:
        kind = jax.devices()[0].device_kind.lower()
    except Exception:
        return 1
    return 2 if "v7" in kind else 1


def _head_layout(K, n_out):
    """Column offsets of the fused head matmul / output slab.

    Layout: [ coeff_logits(K) | cov_diag_raw(K*n_out) | mu(K*n_out)
              | cov_raw(K*n_out^2) | logdet(K) | zero pad to 128 ]
    coeff logits + raw diag are adjacent so one contiguous slice feeds the
    masked softmax/exp and a single fused scatter matmul.
    """
    n2 = n_out * n_out
    off_diag = K
    off_mu = off_diag + K * n_out
    off_cov = off_mu + K * n_out
    off_ld = off_cov + K * n2
    w_total = off_ld + K
    w_pad = _round_up(w_total, 128)
    return off_diag, off_mu, off_cov, off_ld, w_total, w_pad


def mdn_kernel(K, n_out,
               x_ref, w1_ref, b1_ref, w2_ref, b2_ref,
               wh_ref, bh_ref, mask_ref, scomb_ref,
               out_ref):
    mm_dtype = w2_ref.dtype                      # matmul operand dtype (f32/bf16)
    x = x_ref[...]

    # --- trunk: Linear -> ReLU -> Linear -> ReLU (lane-dense padded H) -----
    h = jnp.dot(x, w1_ref[...], preferred_element_type=jnp.float32) + b1_ref[...]
    h = jnp.maximum(h, 0.0)
    h = jnp.dot(h.astype(mm_dtype), w2_ref[...],
                preferred_element_type=jnp.float32) + b2_ref[...]
    h = jnp.maximum(h, 0.0)

    # --- one fused, 128-lane-wide head matmul ------------------------------
    z = jnp.dot(h.astype(mm_dtype), wh_ref[...],
                preferred_element_type=jnp.float32) + bh_ref[...]

    # nonlinear block: cols [0,K) are coeff logits, cols [K, K+K*n_out) are
    # raw cov-diagonal entries.  One masked softmax / exp over the slice.
    Kq = K + K * n_out
    zc = z[:, 0:Kq]
    lane = jax.lax.broadcasted_iota(jnp.int32, (1, Kq), 1)
    is_coeff = lane < K
    mmax = jnp.max(jnp.where(is_coeff, zc, -jnp.inf), axis=1, keepdims=True)
    e = jnp.exp(zc - jnp.where(is_coeff, mmax, 0.0))
    denom = jnp.sum(jnp.where(is_coeff, e, 0.0), axis=1, keepdims=True)
    gathered = jnp.where(is_coeff, e / denom, e)     # [coeff | exp(diag)]

    # assemble the lane-dense output slab:
    #   pass-through / strictly-lower-tri-masked columns of z
    #   + ONE fused 0/1 scatter matmul placing coeff and exp(diag)
    out_ref[...] = (z * mask_ref[...]
                    + jnp.dot(gathered, scomb_ref[...],
                              preferred_element_type=jnp.float32))


def _pack_params(params, K, n_out, matmul_dtype=jnp.float32):
    """Fold all K heads (+ logdet / diag columns) into one wide weight slab."""
    n_in, H = params["w1"].shape
    n2 = n_out * n_out
    off_diag, off_mu, off_cov, off_ld, _, w_pad = _head_layout(K, n_out)
    H_pad = _round_up(H, 128)                     # lane-dense hidden width

    wm, bm = params["wm"], params["bm"]           # (K,H,n_out), (K,1,n_out)
    wv, bv = params["wv"], params["bv"]           # (K,H,n2),   (K,1,n2)
    diag_idx = jnp.arange(n_out) * (n_out + 1)    # flat row-major diag positions

    wm_slab = jnp.transpose(wm, (1, 0, 2)).reshape(H, K * n_out)
    wv_slab = jnp.transpose(wv, (1, 0, 2)).reshape(H, K * n2)
    wv_diag = jnp.transpose(wv[:, :, diag_idx], (1, 0, 2)).reshape(H, K * n_out)
    wv_ld = jnp.transpose(jnp.sum(wv[:, :, diag_idx], axis=2), (1, 0))   # (H, K)

    bm_slab = bm.reshape(1, K * n_out)
    bv_slab = bv.reshape(1, K * n2)
    bv_diag = bv.reshape(K, n2)[:, diag_idx].reshape(1, K * n_out)
    bv_ld = jnp.sum(bv.reshape(K, n2)[:, diag_idx], axis=1).reshape(1, K)

    w_heads = jnp.zeros((H_pad, w_pad), jnp.float32)
    w_heads = w_heads.at[:H, 0:K].set(params["wc"])
    w_heads = w_heads.at[:H, off_diag:off_mu].set(wv_diag)
    w_heads = w_heads.at[:H, off_mu:off_cov].set(wm_slab)
    w_heads = w_heads.at[:H, off_cov:off_ld].set(wv_slab)
    w_heads = w_heads.at[:H, off_ld:off_ld + K].set(wv_ld)

    b_heads = jnp.zeros((1, w_pad), jnp.float32)
    b_heads = b_heads.at[:, 0:K].set(params["bc"])
    b_heads = b_heads.at[:, off_diag:off_mu].set(bv_diag)
    b_heads = b_heads.at[:, off_mu:off_cov].set(bm_slab)
    b_heads = b_heads.at[:, off_cov:off_ld].set(bv_slab)
    b_heads = b_heads.at[:, off_ld:off_ld + K].set(bv_ld)

    # trunk weights zero-padded to H_pad (padded h columns are ReLU(0)=0 and
    # the corresponding W2/W_heads rows are 0, so results are unchanged).
    w1 = jnp.zeros((n_in, H_pad), jnp.float32).at[:, :H].set(params["w1"])
    b1 = jnp.zeros((1, H_pad), jnp.float32).at[:, :H].set(params["b1"])
    w2 = jnp.zeros((H_pad, H_pad), jnp.float32).at[:H, :H].set(params["w2"])
    b2 = jnp.zeros((1, H_pad), jnp.float32).at[:, :H].set(params["b2"])

    # column mask: 1 on pass-through cols (mu, logdet), strictly-lower-tri
    # pattern on cov cols, 0 on coeff-logit / diag-raw / pad cols.
    ii = jnp.arange(n_out)[:, None]
    jj = jnp.arange(n_out)[None, :]
    ltri_flat = (ii > jj).astype(jnp.float32).reshape(1, n2)
    col_mask = jnp.zeros((1, w_pad), jnp.float32)
    col_mask = col_mask.at[:, off_mu:off_cov].set(1.0)
    col_mask = col_mask.at[:, off_cov:off_ld].set(jnp.tile(ltri_flat, (1, K)))
    col_mask = col_mask.at[:, off_ld:off_ld + K].set(1.0)

    # single fused 0/1 scatter matrix: rows [0,K) place coeff into cols [0,K);
    # rows [K, K+K*n_out) place exp(diag) into the cov-block diagonal slots.
    Kq = K + K * n_out
    s_comb = jnp.zeros((Kq, w_pad), jnp.float32)
    s_comb = s_comb.at[jnp.arange(K), jnp.arange(K)].set(1.0)
    j = jnp.arange(K * n_out)
    cols = off_cov + (j // n_out) * n2 + (j % n_out) * (n_out + 1)
    s_comb = s_comb.at[K + j, cols].set(1.0)

    w1 = w1.astype(matmul_dtype)
    w2 = w2.astype(matmul_dtype)
    w_heads = w_heads.astype(matmul_dtype)
    return w1, b1, w2, b2, w_heads, b_heads, col_mask, s_comb


def mdn_forward(x, params, *, K, n_out, tm=512, matmul_dtype=jnp.float32):
    m, n_in = x.shape
    H = params["w1"].shape[1]
    H_pad = _round_up(H, 128)
    off_diag, off_mu, off_cov, off_ld, _, w_pad = _head_layout(K, n_out)
    Kq = K + K * n_out

    # Weight packing is parameter-only glue; under jit it is constant-folded
    # and in a real deployment would be done once at model-load time.
    (w1, b1, w2, b2, w_heads, b_heads,
     col_mask, s_comb) = _pack_params(params, K, n_out, matmul_dtype)

    # --- batch tiling ------------------------------------------------------
    # TM=512 default (per-step overhead dwarfs per-tile compute at TM=128);
    # small batches collapse to a single grid step; on dual-TC parts keep the
    # grid length >= num cores so both TensorCores get work.
    m_pad8 = _round_up(m, 8)
    n_cores = _num_tensorcores()
    tm_eff = min(tm, m_pad8)
    if n_cores > 1:
        tm_eff = min(tm_eff, max(8, _round_up(pl.cdiv(m_pad8, n_cores), 8)))
    tm_eff = _round_up(tm_eff, 8)
    m_pad = _round_up(m_pad8, tm_eff)
    if m_pad != m:
        x = jnp.pad(x, ((0, m_pad - m), (0, 0)))
    x = x.astype(matmul_dtype)
    grid = (m_pad // tm_eff,)

    const = lambda i: (0, 0)
    in_specs = [
        pl.BlockSpec((tm_eff, n_in), lambda i: (i, 0)),   # x: batch-tiled
        pl.BlockSpec((n_in, H_pad), const),               # weights: VMEM-resident
        pl.BlockSpec((1, H_pad), const),
        pl.BlockSpec((H_pad, H_pad), const),
        pl.BlockSpec((1, H_pad), const),
        pl.BlockSpec((H_pad, w_pad), const),
        pl.BlockSpec((1, w_pad), const),
        pl.BlockSpec((1, w_pad), const),
        pl.BlockSpec((Kq, w_pad), const),
    ]
    out_specs = pl.BlockSpec((tm_eff, w_pad), lambda i: (i, 0))

    mm_size = jnp.dtype(matmul_dtype).itemsize
    flops = 2 * m_pad * (n_in * H_pad + H_pad * H_pad + H_pad * w_pad + Kq * w_pad)
    cost = pl.CostEstimate(
        flops=flops,
        transcendentals=m_pad * Kq,
        bytes_accessed=(m_pad * n_in * mm_size + m_pad * w_pad * 4
                        + (n_in * H_pad + H_pad * H_pad + H_pad * w_pad) * mm_size
                        + (2 * H_pad + (2 + Kq) * w_pad) * 4),
    )

    slab = pl.pallas_call(
        functools.partial(mdn_kernel, K, n_out),
        out_shape=jax.ShapeDtypeStruct((m_pad, w_pad), jnp.float32),
        grid=grid,
        in_specs=in_specs,
        out_specs=out_specs,
        compiler_params=pltpu.CompilerParams(
            dimension_semantics=("parallel",)),
        cost_estimate=cost,
    )(x, w1, b1, w2, b2, w_heads, b_heads, col_mask, s_comb)

    # --- wrapper-side layout glue only -------------------------------------
    slab = slab[:m]
    coeff = slab[:, 0:K]
    mu = slab[:, off_mu:off_cov].reshape(m, K, n_out)
    C = slab[:, off_cov:off_ld].reshape(m, K, n_out, n_out)
    log_det = slab[:, off_ld:off_ld + K]
    mu_array = [mu[:, k] for k in range(K)]
    C_array = [C[:, k] for k in range(K)]
    log_det_array = [log_det[:, k] for k in range(K)]
    return coeff, mu_array, C_array, log_det_array


def init_params(key, n_in, n_hidden, n_out, K):
    """Deterministic synthetic weights (PyTorch-Linear-like uniform init)."""
    def linear(key, fan_in, fan_out):
        kw, kb = jax.random.split(key)
        bound = 1.0 / jnp.sqrt(fan_in)
        w = jax.random.uniform(kw, (fan_in, fan_out), jnp.float32, -bound, bound)
        b = jax.random.uniform(kb, (1, fan_out), jnp.float32, -bound, bound)
        return w, b

    keys = jax.random.split(key, 3 + 2 * K)
    w1, b1 = linear(keys[0], n_in, n_hidden)
    w2, b2 = linear(keys[1], n_hidden, n_hidden)
    wc, bc = linear(keys[2], n_hidden, K)

    wm_list, bm_list, wv_list, bv_list = [], [], [], []
    for k in range(K):
        wm, bm = linear(keys[3 + 2 * k], n_hidden, n_out)
        wv, bv = linear(keys[4 + 2 * k], n_hidden, n_out * n_out)
        wm_list.append(wm); bm_list.append(bm)
        wv_list.append(wv); bv_list.append(bv)

    return {
        "w1": w1, "b1": b1, "w2": w2, "b2": b2,
        "wc": wc, "bc": bc,
        "wm": jnp.stack(wm_list), "bm": jnp.stack(bm_list),
        "wv": jnp.stack(wv_list), "bv": jnp.stack(bv_list),
    }


def mdn_reference(x, params, *, K, n_out):
    """Pure-JAX reference of MDN.forward for validation."""
    h = jnp.maximum(x @ params["w1"] + params["b1"], 0.0)
    h = jnp.maximum(h @ params["w2"] + params["b2"], 0.0)
    s = jnp.exp(h @ params["wc"] + params["bc"])
    coeff = s / jnp.sum(s, axis=1, keepdims=True)
    ii = jnp.arange(n_out)[:, None]
    jj = jnp.arange(n_out)[None, :]
    ltri = (ii > jj).astype(jnp.float32)
    diag = (ii == jj).astype(jnp.float32)
    mus, Cs, lds = [], [], []
    for k in range(K):
        mus.append(h @ params["wm"][k] + params["bm"][k])
        out = (h @ params["wv"][k] + params["bv"][k]).reshape(-1, n_out, n_out)
        Cs.append(out * ltri + jnp.exp(out) * diag)
        lds.append(jnp.sum(out * diag, axis=(1, 2)))
    return coeff, mus, Cs, lds


if __name__ == "__main__":
    # Small validation shapes (perf tuning should be benchmarked at m >= 8K).
    m, n_in, n_hidden, n_out, K = 256, 8, 64, 4, 3

    key = jax.random.PRNGKey(0)
    k_x, k_p = jax.random.split(key)
    x = jax.random.normal(k_x, (m, n_in), jnp.float32)
    params = init_params(k_p, n_in, n_hidden, n_out, K)

    # TODO(synk): set matmul_dtype=jnp.bfloat16 on v6e/v7x when the accuracy
    # budget allows (halves weight DMA bytes and uses the fast MXU path).
    fwd = jax.jit(functools.partial(mdn_forward, K=K, n_out=n_out))
    coeff, mu_array, C_array, log_det_array = jax.block_until_ready(fwd(x, params))

    # validate against the pure-JAX reference (f32 path, exact softmax divide)
    coeff_r, mu_r, C_r, ld_r = mdn_reference(x, params, K=K, n_out=n_out)
    assert jnp.allclose(coeff, coeff_r, atol=1e-4, rtol=1e-4)
    for k in range(K):
        assert jnp.allclose(mu_array[k], mu_r[k], atol=1e-4, rtol=1e-4)
        assert jnp.allclose(C_array[k], C_r[k], atol=1e-4, rtol=1e-4)
        assert jnp.allclose(log_det_array[k], ld_r[k], atol=1e-4, rtol=1e-4)

    print("KERNEL_OK")
</pallas_src>

<mosaic_0001>
module attributes {stable_mosaic.version = 11 : i64} {
  func.func @mdn_kernel(%arg0: i32, %arg1: memref<256x8xf32, #tpu.memory_space<vmem>>, %arg2: memref<8x128xf32, #tpu.memory_space<vmem>>, %arg3: memref<1x128xf32, #tpu.memory_space<vmem>>, %arg4: memref<128x128xf32, #tpu.memory_space<vmem>>, %arg5: memref<1x128xf32, #tpu.memory_space<vmem>>, %arg6: memref<128x128xf32, #tpu.memory_space<vmem>>, %arg7: memref<1x128xf32, #tpu.memory_space<vmem>>, %arg8: memref<1x128xf32, #tpu.memory_space<vmem>>, %arg9: memref<15x128xf32, #tpu.memory_space<vmem>>, %arg10: memref<256x128xf32, #tpu.memory_space<vmem>>) attributes {dimension_semantics = [#tpu.dimension_semantics<parallel>], iteration_bounds = array<i64: 1>, scalar_prefetch = 0 : i64, scratch_operands = 0 : i64, tpu.core_type = #tpu.core_type<tc>, window_params = [{transform_indices = @transform_0, window_bounds = array<i64: 256, 8>}, {pipeline_mode = #tpu.pipeline_mode<synchronous>, transform_indices = @transform_1, window_bounds = array<i64: 8, 128>}, {pipeline_mode = #tpu.pipeline_mode<synchronous>, transform_indices = @transform_2, window_bounds = array<i64: 1, 128>}, {pipeline_mode = #tpu.pipeline_mode<synchronous>, transform_indices = @transform_3, window_bounds = array<i64: 128, 128>}, {pipeline_mode = #tpu.pipeline_mode<synchronous>, transform_indices = @transform_4, window_bounds = array<i64: 1, 128>}, {pipeline_mode = #tpu.pipeline_mode<synchronous>, transform_indices = @transform_5, window_bounds = array<i64: 128, 128>}, {pipeline_mode = #tpu.pipeline_mode<synchronous>, transform_indices = @transform_6, window_bounds = array<i64: 1, 128>}, {pipeline_mode = #tpu.pipeline_mode<synchronous>, transform_indices = @transform_7, window_bounds = array<i64: 1, 128>}, {pipeline_mode = #tpu.pipeline_mode<synchronous>, transform_indices = @transform_8, window_bounds = array<i64: 15, 128>}, {transform_indices = @transform_9, window_bounds = array<i64: 256, 128>}]} {
    %c0 = arith.constant 0 : index
    %c0_0 = arith.constant 0 : index
    %0 = vector.load %arg1[%c0, %c0_0] : memref<256x8xf32, #tpu.memory_space<vmem>>, vector<256x8xf32>
    %c0_1 = arith.constant 0 : index
    %c0_2 = arith.constant 0 : index
    %1 = vector.load %arg2[%c0_1, %c0_2] : memref<8x128xf32, #tpu.memory_space<vmem>>, vector<8x128xf32>
    %cst = arith.constant dense<0.000000e+00> : vector<256x128xf32>
    %2 = tpu.matmul %0, %1, %cst {dimension_numbers = #tpu.dot_dimension_numbers<[1], [0], [0], [1], [0, 0, 1, 1], [], []>} : vector<256x8xf32>, vector<8x128xf32>, vector<256x128xf32> -> vector<256x128xf32>
    %c0_3 = arith.constant 0 : index
    %c0_4 = arith.constant 0 : index
    %3 = vector.load %arg3[%c0_3, %c0_4] : memref<1x128xf32, #tpu.memory_space<vmem>>, vector<1x128xf32>
    %4 = vector.broadcast %3 : vector<1x128xf32> to vector<256x128xf32>
    %5 = arith.addf %2, %4 : vector<256x128xf32>
    %cst_5 = arith.constant 0.000000e+00 : f32
    %6 = vector.broadcast %cst_5 : f32 to vector<256x128xf32>
    %7 = arith.maximumf %5, %6 : vector<256x128xf32>
    %c0_6 = arith.constant 0 : index
    %c0_7 = arith.constant 0 : index
    %8 = vector.load %arg4[%c0_6, %c0_7] : memref<128x128xf32, #tpu.memory_space<vmem>>, vector<128x128xf32>
    %cst_8 = arith.constant dense<0.000000e+00> : vector<256x128xf32>
    %9 = tpu.matmul %7, %8, %cst_8 {dimension_numbers = #tpu.dot_dimension_numbers<[1], [0], [0], [1], [0, 0, 1, 1], [], []>} : vector<256x128xf32>, vector<128x128xf32>, vector<256x128xf32> -> vector<256x128xf32>
    %c0_9 = arith.constant 0 : index
    %c0_10 = arith.constant 0 : index
    %10 = vector.load %arg5[%c0_9, %c0_10] : memref<1x128xf32, #tpu.memory_space<vmem>>, vector<1x128xf32>
    %11 = vector.broadcast %10 : vector<1x128xf32> to vector<256x128xf32>
    %12 = arith.addf %9, %11 : vector<256x128xf32>
    %cst_11 = arith.constant 0.000000e+00 : f32
    %13 = vector.broadcast %cst_11 : f32 to vector<256x128xf32>
    %14 = arith.maximumf %12, %13 : vector<256x128xf32>
    %c0_12 = arith.constant 0 : index
    %c0_13 = arith.constant 0 : index
    %15 = vector.load %arg6[%c0_12, %c0_13] : memref<128x128xf32, #tpu.memory_space<vmem>>, vector<128x128xf32>
    %cst_14 = arith.constant dense<0.000000e+00> : vector<256x128xf32>
    %16 = tpu.matmul %14, %15, %cst_14 {dimension_numbers = #tpu.dot_dimension_numbers<[1], [0], [0], [1], [0, 0, 1, 1], [], []>} : vector<256x128xf32>, vector<128x128xf32>, vector<256x128xf32> -> vector<256x128xf32>
    %c0_15 = arith.constant 0 : index
    %c0_16 = arith.constant 0 : index
    %17 = vector.load %arg7[%c0_15, %c0_16] : memref<1x128xf32, #tpu.memory_space<vmem>>, vector<1x128xf32>
    %18 = vector.broadcast %17 : vector<1x128xf32> to vector<256x128xf32>
    %19 = arith.addf %16, %18 : vector<256x128xf32>
    %20 = vector.extract_strided_slice %19 {offsets = [0, 0], sizes = [256, 15], strides = [1, 1]} : vector<256x128xf32> to vector<256x15xf32>
    %21 = tpu.iota {dimensions = array<i32: 1>} : vector<1x15xi32>
    %c3_i32 = arith.constant 3 : i32
    %22 = vector.broadcast %c3_i32 : i32 to vector<1x15xi32>
    %23 = arith.cmpi slt, %21, %22 : vector<1x15xi32>
    %cst_17 = arith.constant 0xFF800000 : f32
    %24 = vector.shape_cast %23 : vector<1x15xi1> to vector<1x15xi1>
    %25 = vector.broadcast %24 : vector<1x15xi1> to vector<256x15xi1>
    %26 = vector.broadcast %cst_17 : f32 to vector<256x15xf32>
    %27 = arith.select %25, %20, %26 : vector<256x15xi1>, vector<256x15xf32>
    %cst_18 = arith.constant dense<0xFF800000> : vector<256xf32>
    %28 = vector.multi_reduction <maximumf>, %27, %cst_18 [1] : vector<256x15xf32> to vector<256xf32>
    %29 = vector.shape_cast %28 : vector<256xf32> to vector<256x1xf32>
    %cst_19 = arith.constant 0.000000e+00 : f32
    %30 = vector.shape_cast %23 : vector<1x15xi1> to vector<1x15xi1>
    %31 = vector.broadcast %30 : vector<1x15xi1> to vector<256x15xi1>
    %32 = vector.shape_cast %29 : vector<256x1xf32> to vector<256x1xf32>
    %33 = vector.broadcast %32 : vector<256x1xf32> to vector<256x15xf32>
    %34 = vector.broadcast %cst_19 : f32 to vector<256x15xf32>
    %35 = arith.select %31, %33, %34 : vector<256x15xi1>, vector<256x15xf32>
    %36 = arith.subf %20, %35 : vector<256x15xf32>
    %37 = math.exp %36 : vector<256x15xf32>
    %cst_20 = arith.constant 0.000000e+00 : f32
    %38 = vector.shape_cast %23 : vector<1x15xi1> to vector<1x15xi1>
    %39 = vector.broadcast %38 : vector<1x15xi1> to vector<256x15xi1>
    %40 = vector.broadcast %cst_20 : f32 to vector<256x15xf32>
    %41 = arith.select %39, %37, %40 : vector<256x15xi1>, vector<256x15xf32>
    %cst_21 = arith.constant dense<0.000000e+00> : vector<256xf32>
    %42 = vector.multi_reduction <add>, %41, %cst_21 [1] : vector<256x15xf32> to vector<256xf32>
    %43 = vector.shape_cast %42 : vector<256xf32> to vector<256x1xf32>
    %44 = vector.broadcast %43 : vector<256x1xf32> to vector<256x15xf32>
    %45 = arith.divf %37, %44 : vector<256x15xf32>
    %46 = vector.shape_cast %23 : vector<1x15xi1> to vector<1x15xi1>
    %47 = vector.broadcast %46 : vector<1x15xi1> to vector<256x15xi1>
    %48 = arith.select %47, %45, %37 : vector<256x15xi1>, vector<256x15xf32>
    %c0_22 = arith.constant 0 : index
    %c0_23 = arith.constant 0 : index
    %49 = vector.load %arg8[%c0_22, %c0_23] : memref<1x128xf32, #tpu.memory_space<vmem>>, vector<1x128xf32>
    %50 = vector.broadcast %49 : vector<1x128xf32> to vector<256x128xf32>
    %51 = arith.mulf %19, %50 : vector<256x128xf32>
    %c0_24 = arith.constant 0 : index
    %c0_25 = arith.constant 0 : index
    %52 = vector.load %arg9[%c0_24, %c0_25] : memref<15x128xf32, #tpu.memory_space<vmem>>, vector<15x128xf32>
    %cst_26 = arith.constant dense<0.000000e+00> : vector<256x128xf32>
    %53 = tpu.matmul %48, %52, %cst_26 {dimension_numbers = #tpu.dot_dimension_numbers<[1], [0], [0], [1], [0, 0, 1, 1], [], []>} : vector<256x15xf32>, vector<15x128xf32>, vector<256x128xf32> -> vector<256x128xf32>
    %54 = arith.addf %51, %53 : vector<256x128xf32>
    %c0_27 = arith.constant 0 : index
    %c0_28 = arith.constant 0 : index
    %55 = vector.load %arg10[%c0_27, %c0_28] : memref<256x128xf32, #tpu.memory_space<vmem>>, vector<256x128xf32>
    tpu.vector_store %arg10[%c0_27, %c0_28], %54 {strides = array<i32>} : memref<256x128xf32, #tpu.memory_space<vmem>>, vector<256x128xf32>,
    return
  }
  func.func @transform_0(%arg0: i32) -> (i32, i32) {
    %c0_i32 = arith.constant 0 : i32
    %c0_i32_0 = arith.constant 0 : i32
    return %arg0, %c0_i32 : i32, i32
  }
  func.func @transform_1(%arg0: i32) -> (i32, i32) {
    %c0_i32 = arith.constant 0 : i32
    %c0_i32_0 = arith.constant 0 : i32
    %c0_i32_1 = arith.constant 0 : i32
    return %c0_i32, %c0_i32_0 : i32, i32
  }
  func.func @transform_2(%arg0: i32) -> (i32, i32) {
    %c0_i32 = arith.constant 0 : i32
    %c0_i32_0 = arith.constant 0 : i32
    %c0_i32_1 = arith.constant 0 : i32
    return %c0_i32, %c0_i32_0 : i32, i32
  }
  func.func @transform_3(%arg0: i32) -> (i32, i32) {
    %c0_i32 = arith.constant 0 : i32
    %c0_i32_0 = arith.constant 0 : i32
    %c0_i32_1 = arith.constant 0 : i32
    return %c0_i32, %c0_i32_0 : i32, i32
  }
  func.func @transform_4(%arg0: i32) -> (i32, i32) {
    %c0_i32 = arith.constant 0 : i32
    %c0_i32_0 = arith.constant 0 : i32
    %c0_i32_1 = arith.constant 0 : i32
    return %c0_i32, %c0_i32_0 : i32, i32
  }
  func.func @transform_5(%arg0: i32) -> (i32, i32) {
    %c0_i32 = arith.constant 0 : i32
    %c0_i32_0 = arith.constant 0 : i32
    %c0_i32_1 = arith.constant 0 : i32
    return %c0_i32, %c0_i32_0 : i32, i32
  }
  func.func @transform_6(%arg0: i32) -> (i32, i32) {
    %c0_i32 = arith.constant 0 : i32
    %c0_i32_0 = arith.constant 0 : i32
    %c0_i32_1 = arith.constant 0 : i32
    return %c0_i32, %c0_i32_0 : i32, i32
  }
  func.func @transform_7(%arg0: i32) -> (i32, i32) {
    %c0_i32 = arith.constant 0 : i32
    %c0_i32_0 = arith.constant 0 : i32
    %c0_i32_1 = arith.constant 0 : i32
    return %c0_i32, %c0_i32_0 : i32, i32
  }
  func.func @transform_8(%arg0: i32) -> (i32, i32) {
    %c0_i32 = arith.constant 0 : i32
    %c0_i32_0 = arith.constant 0 : i32
    %c0_i32_1 = arith.constant 0 : i32
    return %c0_i32, %c0_i32_0 : i32, i32
  }
  func.func @transform_9(%arg0: i32) -> (i32, i32) {
    %c0_i32 = arith.constant 0 : i32
    %c0_i32_0 = arith.constant 0 : i32
    return %arg0, %c0_i32 : i32, i32
  }
}

</mosaic_0001>

<bundles_post_ra>
// kernel: mdn_forward.1
= control target key start
LH: loop header
LB: loop body
LE: loop exit
PB: predicated region body
PF: predicated region fallthrough
CT: control target
= control target key end

     0   :  { %vm72_vm0 = vcmask 64512   ;;  %vm991_vm2 = vcmask 121856   ;;  %vm1577_vm3 = vcmask 1046528   ;;  %vm2569_vm4 = vmmov 1   ;;  %s3781_s1 = inlined_call_operand.vmem [shape: f32[8,128], index: 1, kind: input, shape index: {}]   ;;  %s3782_s0 = inlined_call_operand.vmem [shape: f32[256,8], index: 0, kind: input, shape index: {}]   ;;  %s3783_s3 = inlined_call_operand.vmem [shape: f32[128,128], index: 3, kind: input, shape index: {}]   ;;  %s3784_s5 = inlined_call_operand.vmem [shape: f32[128,128], index: 5, kind: input, shape index: {}]   ;;  %s3785_s2 = inlined_call_operand.vmem [shape: f32[1,128], index: 2, kind: input, shape index: {}]   ;;  %s3786_s4 = inlined_call_operand.vmem [shape: f32[1,128], index: 4, kind: input, shape index: {}]   ;;  %s3787_s6 = inlined_call_operand.vmem [shape: f32[1,128], index: 6, kind: input, shape index: {}]   ;;  %s3788_s8 = inlined_call_operand.vmem [shape: f32[15,128], index: 8, kind: input, shape index: {}]   ;;  %s3789_s7 = inlined_call_operand.vmem [shape: f32[1,128], index: 7, kind: input, shape index: {}]   ;;  %s3790_s9 = inlined_call_operand.vmem [shape: f32[256,128], index: 9, kind: output, shape index: {}]  }
   0x1   :  { %v64_v0 = vld [vmem:[%s3781_s1] sm:$0xff]  ;;  %v33_v2 = vld [vmem:[%s3782_s0 + $0x8] sm:$0xff]  ;;  %v34_v3 = vld [vmem:[%s3782_s0 + $0x10] sm:$0xff] }
   0x2   :  { %v32_v1 = vld [vmem:[%s3782_s0] sm:$0xff]  ;;  %2106 = vmatprep.subr.mxu0 %v64_v0  ;;  %v35_v4 = vld [vmem:[%s3782_s0 + $0x18] sm:$0xff]  ;;  %v37_v6 = vld [vmem:[%s3782_s0 + $0x28] sm:$0xff] }
   0x3   :  { %2108 = vmatprep.mubr.msk.f32.mxu0 %vm72_vm0, %v32_v1  ;;  %2107 = vmatpush3.msra.mxu0 %v64_v0  ;;  %v36_v5 = vld [vmem:[%s3782_s0 + $0x20] sm:$0xff]  ;;  %v38_v7 = vld [vmem:[%s3782_s0 + $0x30] sm:$0xff]  ;;  %v427_v9 = vld [vmem:[%s3783_s3 + $0x8] sm:$0xff] }
   0x4   :  { %2109 = vmatmul.mubr.msk.f32.vlgmr.msra.gmra.mrb[0].mxu0 %vm72_vm0, %v33_v2  ;;  %v426_v8 = vld [vmem:[%s3783_s3] sm:$0xff]  ;;  %v428_v10 = vld [vmem:[%s3783_s3 + $0x10] sm:$0xff]  ;;  %v39_v11 = vld [vmem:[%s3782_s0 + $0x38] sm:$0xff] }
   0x5   :  { %2111 = vmatprep.mubr.msk.f32.mxu0 %vm72_vm0, %v34_v3  ;;  %v2368_v12 = vpack.c.bf16 %v427_v9, %v426_v8  ;;  %v429_v13 = vld [vmem:[%s3783_s3 + $0x18] sm:$0xff]  ;;  %v40_v14 = vld [vmem:[%s3782_s0 + $0x40] sm:$0xff]  ;;  %v431_v17 = vld [vmem:[%s3783_s3 + $0x28] sm:$0xff] }
   0x6   :  { %v2372_v15 = vpack.c.bf16 %v429_v13, %v428_v10  ;;  %v430_v16 = vld [vmem:[%s3783_s3 + $0x20] sm:$0xff]  ;;  %v41_v18 = vld [vmem:[%s3782_s0 + $0x48] sm:$0xff]  ;;  %v42_v20 = vld [vmem:[%s3782_s0 + $0x50] sm:$0xff] }
   0x7   :  { %2369 = vmatprep.subr.bf16.mxu1 %v2368_v12  ;;  %v2376_v19 = vpack.c.bf16 %v431_v17, %v430_v16  ;;  %v432_v21 = vld [vmem:[%s3783_s3 + $0x30] sm:$0xff]  ;;  %v433_v22 = vld [vmem:[%s3783_s3 + $0x38] sm:$0xff]  ;;  %v44_v25 = vld [vmem:[%s3782_s0 + $0x60] sm:$0xff] }
   0x8   :  { %2112 = vmatmul.mubr.msk.f32.gmra.mrb[2].mxu0 %vm72_vm0, %v35_v4  ;;  %2371 = vmatpush3.bf16.msra.mxu1 %v2368_v12  ;;  %v43_v23 = vld [vmem:[%s3782_s0 + $0x58] sm:$0xff]  ;;  %v2380_v24 = vpack.c.bf16 %v433_v22, %v432_v21  ;;  %v434_v26 = vld [vmem:[%s3783_s3 + $0x40] sm:$0xff]  ;;  %v435_v27 = vld [vmem:[%s3783_s3 + $0x48] sm:$0xff] }
   0x9   :  { %2114 = vmatprep.mubr.msk.f32.mxu0 %vm72_vm0, %v36_v5  ;;  %2373 = vmatprep.subr.bf16.mxu1 %v2372_v15  ;;  %v45_v28 = vld [vmem:[%s3782_s0 + $0x68] sm:$0xff]  ;;  %v2384_v29 = vpack.c.bf16 %v435_v27, %v434_v26  ;;  %v46_v30 = vld [vmem:[%s3782_s0 + $0x70] sm:$0xff]  ;;  %v437_v32 = vld [vmem:[%s3783_s3 + $0x58] sm:$0xff] }
   0xa   :  { %v436_v31 = vld [vmem:[%s3783_s3 + $0x50] sm:$0xff]  ;;  %v47_v33 = vld [vmem:[%s3782_s0 + $0x78] sm:$0xff]  ;;  %v48_v35 = vld [vmem:[%s3782_s0 + $0x80] sm:$0xff] }
   0xb   :  { %v2388_v34 = vpack.c.bf16 %v437_v32, %v436_v31  ;;  %v438_v36 = vld [vmem:[%s3783_s3 + $0x60] sm:$0xff]  ;;  %v439_v37 = vld [vmem:[%s3783_s3 + $0x68] sm:$0xff]  ;;  %v50_v40 = vld [vmem:[%s3782_s0 + $0x90] sm:$0xff] }
   0xc   :  { %2115 = vmatmul.mubr.msk.f32.gmra.mrb[4].mxu0 %vm72_vm0, %v37_v6  ;;  %2375 = vmatpush3.bf16.msra.mxu1 %v2372_v15  ;;  %v49_v38 = vld [vmem:[%s3782_s0 + $0x88] sm:$0xff]  ;;  %v2392_v39 = vpack.c.bf16 %v439_v37, %v438_v36  ;;  %v51_v41 = vld [vmem:[%s3782_s0 + $0x98] sm:$0xff]  ;;  %v52_v42 = vld [vmem:[%s3782_s0 + $0xa0] sm:$0xff] }
   0xd   :  { %2117 = vmatprep.mubr.msk.f32.mxu0 %vm72_vm0, %v38_v7  ;;  %2377 = vmatprep.subr.bf16.mxu1 %v2376_v19  ;;  %v53_v43 = vld [vmem:[%s3782_s0 + $0xa8] sm:$0xff]  ;;  %v54_v44 = vld [vmem:[%s3782_s0 + $0xb0] sm:$0xff]  ;;  %v55_v45 = vld [vmem:[%s3782_s0 + $0xb8] sm:$0xff] }
   0xe   :  { %v56_v46 = vld [vmem:[%s3782_s0 + $0xc0] sm:$0xff]  ;;  %v57_v47 = vld [vmem:[%s3782_s0 + $0xc8] sm:$0xff]  ;;  %v58_v48 = vld [vmem:[%s3782_s0 + $0xd0] sm:$0xff] }
   0xf   :  { %v59_v49 = vld [vmem:[%s3782_s0 + $0xd8] sm:$0xff]  ;;  %v60_v50 = vld [vmem:[%s3782_s0 + $0xe0] sm:$0xff]  ;;  %v61_v51 = vld [vmem:[%s3782_s0 + $0xe8] sm:$0xff] }
  0x10   :  { %2118 = vmatmul.mubr.msk.f32.gmra.mrb[6].mxu0 %vm72_vm0, %v39_v11  ;;  %2379 = vmatpush3.bf16.msra.mxu1 %v2376_v19  ;;  %v62_v52 = vld [vmem:[%s3782_s0 + $0xf0] sm:$0xff]  ;;  %v63_v53 = vld [vmem:[%s3782_s0 + $0xf8] sm:$0xff]  ;;  %v706_v57 = vld [vmem:[%s3784_s5] sm:$0xff] }
  0x11   :  { %2120 = vmatprep.mubr.msk.f32.mxu0 %vm72_vm0, %v40_v14  ;;  %2381 = vmatprep.subr.bf16.mxu1 %v2380_v24  ;;  %v440_v54 = vld [vmem:[%s3783_s3 + $0x70] sm:$0xff]  ;;  %v441_v55 = vld [vmem:[%s3783_s3 + $0x78] sm:$0xff]  ;;  %v707_v58 = vld [vmem:[%s3784_s5 + $0x8] sm:$0xff] }
  0x12   :  { %v2396_v56 = vpack.c.bf16 %v441_v55, %v440_v54  ;;  %v708_v59 = vld [vmem:[%s3784_s5 + $0x10] sm:$0xff]  ;;  %v2400_v60 = vpack.c.bf16 %v707_v58, %v706_v57  ;;  %v709_v61 = vld [vmem:[%s3784_s5 + $0x18] sm:$0xff]  ;;  %v710_v63 = vld [vmem:[%s3784_s5 + $0x20] sm:$0xff] }
  0x13   :  { %v2404_v62 = vpack.c.bf16 %v709_v61, %v708_v59  ;;  %v711_v0 = vld [vmem:[%s3784_s5 + $0x28] sm:$0xff]  ;;  %v712_v2 = vld [vmem:[%s3784_s5 + $0x30] sm:$0xff]  ;;  %v713_v3 = vld [vmem:[%s3784_s5 + $0x38] sm:$0xff] }
  0x14   :  { %2121 = vmatmul.mubr.msk.f32.gmra.mrb[8].mxu0 %vm72_vm0, %v41_v18  ;;  %2383 = vmatpush3.bf16.msra.mxu1 %v2380_v24  ;;  %v2408_v1 = vpack.c.bf16 %v711_v0, %v710_v63  ;;  %v2412_v4 = vpack.c.bf16 %v713_v3, %v712_v2  ;;  %v714_v5 = vld [vmem:[%s3784_s5 + $0x40] sm:$0xff]  ;;  %v715_v6 = vld [vmem:[%s3784_s5 + $0x48] sm:$0xff]  ;;  %v716_v8 = vld [vmem:[%s3784_s5 + $0x50] sm:$0xff] }
  0x15   :  { %2123 = vmatprep.mubr.msk.f32.mxu0 %vm72_vm0, %v42_v20  ;;  %2385 = vmatprep.subr.bf16.mxu1 %v2384_v29  ;;  %v2416_v7 = vpack.c.bf16 %v715_v6, %v714_v5  ;;  %v717_v9 = vld [vmem:[%s3784_s5 + $0x58] sm:$0xff]  ;;  %v718_v11 = vld [vmem:[%s3784_s5 + $0x60] sm:$0xff]  ;;  %v719_v12 = vld [vmem:[%s3784_s5 + $0x68] sm:$0xff] }
  0x16   :  { %2401 = vmatprep.subr.bf16.mxu0 %v2400_v60  ;;  %v2420_v10 = vpack.c.bf16 %v717_v9, %v716_v8  ;;  %v2424_v13 = vpack.c.bf16 %v719_v12, %v718_v11  ;;  %v720_v14 = vld [vmem:[%s3784_s5 + $0x70] sm:$0xff]  ;;  %v721_v15 = vld [vmem:[%s3784_s5 + $0x78] sm:$0xff]  ;;  %v2850_v17 = vld [vmem:[%s3785_s2] ss:$0 sm:$0xff] }
  0x17   :  { %2403 = vmatpush3.bf16.msra.mxu0 %v2400_v60  ;;  %v2428_v16 = vpack.c.bf16 %v721_v15, %v720_v14  ;;  %vm2433_vm5 = vmpackc.low %vm1577_vm3, %vm2569_vm4 }
  0x18   :  { %2124 = vmatmul.mubr.msk.f32.gmra.mrb[10].mxu0 %vm72_vm0, %v43_v23  ;;  %2387 = vmatpush3.bf16.msra.mxu1 %v2384_v29 }
  0x19   :  { %2126 = vmatprep.mubr.msk.f32.mxu0 %vm72_vm0, %v44_v25  ;;  %2389 = vmatprep.subr.bf16.mxu1 %v2388_v34 }
  0x1a   :  { %2405 = vmatprep.subr.bf16.mxu0 %v2404_v62 }
  0x1b   :  { %2407 = vmatpush3.bf16.msra.mxu0 %v2404_v62 }
  0x1c   :  { %2127 = vmatmul.mubr.msk.f32.gmra.mrb[12].mxu0 %vm72_vm0, %v45_v28  ;;  %2391 = vmatpush3.bf16.msra.mxu1 %v2388_v34 }
  0x1d   :  { %2129 = vmatprep.mubr.msk.f32.mxu0 %vm72_vm0, %v46_v30  ;;  %2393 = vmatprep.subr.bf16.mxu1 %v2392_v39 }
  0x1e   :  { %2409 = vmatprep.subr.bf16.mxu0 %v2408_v1 }
  0x1f   :  { %2411 = vmatpush3.bf16.msra.mxu0 %v2408_v1 }
  0x20   :  { %2130 = vmatmul.mubr.msk.f32.gmra.mrb[14].mxu0 %vm72_vm0, %v47_v33  ;;  %2395 = vmatpush3.bf16.msra.mxu1 %v2392_v39 }
  0x21   :  { %2132 = vmatprep.mubr.msk.f32.mxu0 %vm72_vm0, %v48_v35  ;;  %2397 = vmatprep.subr.bf16.mxu1 %v2396_v56 }
  0x22   :  { %2413 = vmatprep.subr.bf16.mxu0 %v2412_v4 }
  0x23   :  { %2415 = vmatpush3.bf16.msra.mxu0 %v2412_v4 }
  0x24   :  { %2133 = vmatmul.mubr.msk.f32.gmra.mrb[16].mxu0 %vm72_vm0, %v49_v38  ;;  %2399 = vmatpush3.bf16.msra.mxu1 %v2396_v56 }
  0x25   :  { %2135 = vmatprep.mubr.msk.f32.mxu0 %vm72_vm0, %v50_v40  ;;  %2417 = vmatprep.subr.bf16.mxu0 %v2416_v7 }
  0x27   :  { %2419 = vmatpush3.bf16.msra.mxu0 %v2416_v7 }
  0x28   :  { %2136 = vmatmul.mubr.msk.f32.gmra.mrb[18].mxu0 %vm72_vm0, %v51_v41  ;;  %2421 = vmatprep.subr.bf16.mxu0 %v2420_v10 }
  0x29   :  { %2138 = vmatprep.mubr.msk.f32.mxu0 %vm72_vm0, %v52_v42 }
  0x2b   :  { %2423 = vmatpush3.bf16.msra.mxu0 %v2420_v10 }
  0x2c   :  { %2139 = vmatmul.mubr.msk.f32.gmra.mrb[20].mxu0 %vm72_vm0, %v53_v43  ;;  %2425 = vmatprep.subr.bf16.mxu0 %v2424_v13 }
  0x2d   :  { %2141 = vmatprep.mubr.msk.f32.mxu0 %vm72_vm0, %v54_v44 }
  0x2f   :  { %2427 = vmatpush3.bf16.msra.mxu0 %v2424_v13 }
  0x30   :  { %2142 = vmatmul.mubr.msk.f32.gmra.mrb[22].mxu0 %vm72_vm0, %v55_v45  ;;  %2429 = vmatprep.subr.bf16.mxu0 %v2428_v16 }
  0x31   :  { %2144 = vmatprep.mubr.msk.f32.mxu0 %vm72_vm0, %v56_v46 }
  0x33   :  { %2431 = vmatpush3.bf16.msra.mxu0 %v2428_v16 }
  0x34   :  { %2145 = vmatmul.mubr.msk.f32.gmra.mrb[24].mxu0 %vm72_vm0, %v57_v47 }
  0x35   :  { %2147 = vmatprep.mubr.msk.f32.mxu0 %vm72_vm0, %v58_v48 }
  0x38   :  { %2148 = vmatmul.mubr.msk.f32.gmra.mrb[26].mxu0 %vm72_vm0, %v59_v49 }
  0x39   :  { %2150 = vmatprep.mubr.msk.f32.mxu0 %vm72_vm0, %v60_v50 }
  0x3c   :  { %2151 = vmatmul.mubr.msk.f32.gmra.mrb[28].mxu0 %vm72_vm0, %v61_v51 }
  0x3d   :  { %2153 = vmatprep.mubr.msk.f32.mxu0 %vm72_vm0, %v62_v52 }
  0x40   :  { %2154 = vmatmul.mubr.msk.f32.gmra.mrb[30].mxu0 %vm72_vm0, %v63_v53 }
  0xd7   :  { %v2110_v18 = vpop.f32.mrb[0].mxu0 }
  0xd8   :  { %v241_v19 = vadd.f32 %v2110_v18, %v2850_v17  ;;  %v235_v20 = vpop.f32.mrb[1].mxu0 }
  0xd9   :  { %v236_v21 = vadd.f32 %v2850_v17, %v235_v20 }
  0xda   :  { %v395_v24 = vmax.f32 %v241_v19, 0.0 }
  0xdb   :  { %v2113_v22 = vpop.f32.mrb[2].mxu0  ;;  %v394_v23 = vmax.f32 %v236_v21, 0.0 }
  0xdc   :  { %v251_v25 = vadd.f32 %v2113_v22, %v2850_v17  ;;  %v245_v26 = vpop.f32.mrb[3].mxu0 }
  0xdd   :  { %v246_v27 = vadd.f32 %v2850_v17, %v245_v26  ;;  %2188 = vmatprep.mubr.f32.mxu1 %v394_v23 }
  0xde   :  { %2189 = vmatmul.mubr.f32.vlgmr.msra.gmra.mrb[0].mxu1 %v395_v24  ;;  %v397_v30 = vmax.f32 %v251_v25, 0.0 }
  0xdf   :  { %v396_v28 = vmax.f32 %v246_v27, 0.0  ;;  %v2116_v29 = vpop.f32.mrb[4].mxu0 }
  0xe0   :  { %v261_v31 = vadd.f32 %v2116_v29, %v2850_v17  ;;  %v255_v32 = vpop.f32.mrb[5].mxu0 }
  0xe1   :  { %v256_v33 = vadd.f32 %v2850_v17, %v255_v32  ;;  %2191 = vmatprep.mubr.f32.mxu1 %v396_v28 }
  0xe2   :  { %2192 = vmatmul.mubr.f32.gmra.mrb[2].mxu1 %v397_v30  ;;  %v399_v36 = vmax.f32 %v261_v31, 0.0 }
  0xe3   :  { %v398_v34 = vmax.f32 %v256_v33, 0.0  ;;  %v2119_v35 = vpop.f32.mrb[6].mxu0 }
  0xe4   :  { %v271_v37 = vadd.f32 %v2119_v35, %v2850_v17  ;;  %v265_v38 = vpop.f32.mrb[7].mxu0 }
  0xe5   :  { %v266_v39 = vadd.f32 %v2850_v17, %v265_v38  ;;  %2194 = vmatprep.mubr.f32.mxu1 %v398_v34 }
  0xe6   :  { %2195 = vmatmul.mubr.f32.gmra.mrb[4].mxu1 %v399_v36  ;;  %v401_v42 = vmax.f32 %v271_v37, 0.0 }
  0xe7   :  { %v400_v40 = vmax.f32 %v266_v39, 0.0  ;;  %v2122_v41 = vpop.f32.mrb[8].mxu0 }
  0xe8   :  { %v281_v43 = vadd.f32 %v2122_v41, %v2850_v17  ;;  %v275_v44 = vpop.f32.mrb[9].mxu0 }
  0xe9   :  { %v276_v45 = vadd.f32 %v2850_v17, %v275_v44  ;;  %2197 = vmatprep.mubr.f32.mxu1 %v400_v40 }
  0xea   :  { %v403_v46 = vmax.f32 %v281_v43, 0.0  ;;  %2198 = vmatmul.mubr.f32.gmra.mrb[6].mxu1 %v401_v42 }
  0xeb   :  { %v402_v47 = vmax.f32 %v276_v45, 0.0  ;;  %v2125_v48 = vpop.f32.mrb[10].mxu0 }
  0xec   :  { %v291_v49 = vadd.f32 %v2125_v48, %v2850_v17  ;;  %v285_v50 = vpop.f32.mrb[11].mxu0 }
  0xed   :  { %2200 = vmatprep.mubr.f32.mxu1 %v402_v47  ;;  %v286_v51 = vadd.f32 %v2850_v17, %v285_v50 }
  0xee   :  { %v405_v52 = vmax.f32 %v291_v49, 0.0  ;;  %2201 = vmatmul.mubr.f32.gmra.mrb[8].mxu1 %v403_v46 }
  0xef   :  { %v404_v53 = vmax.f32 %v286_v51, 0.0  ;;  %v2128_v54 = vpop.f32.mrb[12].mxu0  ;;  %v2887_v51 = vld [vmem:[%s3786_s4] ss:$0 sm:$0xff] }
  0xf0   :  { %v301_v55 = vadd.f32 %v2128_v54, %v2850_v17  ;;  %v295_v56 = vpop.f32.mrb[13].mxu0 }
  0xf1   :  { %v296_v57 = vadd.f32 %v2850_v17, %v295_v56  ;;  %2203 = vmatprep.mubr.f32.mxu1 %v404_v53 }
  0xf2   :  { %v407_v58 = vmax.f32 %v301_v55, 0.0  ;;  %2204 = vmatmul.mubr.f32.gmra.mrb[10].mxu1 %v405_v52 }
  0xf3   :  { %v406_v59 = vmax.f32 %v296_v57, 0.0  ;;  %v2131_v60 = vpop.f32.mrb[14].mxu0 }
  0xf4   :  { %v311_v61 = vadd.f32 %v2131_v60, %v2850_v17  ;;  %v305_v62 = vpop.f32.mrb[15].mxu0 }
  0xf5   :  { %v306_v63 = vadd.f32 %v2850_v17, %v305_v62  ;;  %2206 = vmatprep.mubr.f32.mxu1 %v406_v59 }
  0xf6   :  { %v409_v0 = vmax.f32 %v311_v61, 0.0  ;;  %2207 = vmatmul.mubr.f32.gmra.mrb[12].mxu1 %v407_v58 }
  0xf7   :  { %v408_v1 = vmax.f32 %v306_v63, 0.0  ;;  %v2134_v2 = vpop.f32.mrb[16].mxu0 }
  0xf8   :  { %v321_v3 = vadd.f32 %v2134_v2, %v2850_v17  ;;  %v315_v4 = vpop.f32.mrb[17].mxu0 }
  0xf9   :  { %v316_v5 = vadd.f32 %v2850_v17, %v315_v4  ;;  %2209 = vmatprep.mubr.f32.mxu1 %v408_v1 }
  0xfa   :  { %v411_v6 = vmax.f32 %v321_v3, 0.0  ;;  %2210 = vmatmul.mubr.f32.gmra.mrb[14].mxu1 %v409_v0 }
  0xfb   :  { %v410_v7 = vmax.f32 %v316_v5, 0.0  ;;  %v2137_v8 = vpop.f32.mrb[18].mxu0 }
  0xfc   :  { %v331_v9 = vadd.f32 %v2137_v8, %v2850_v17  ;;  %v325_v10 = vpop.f32.mrb[19].mxu0 }
  0xfd   :  { %v326_v11 = vadd.f32 %v2850_v17, %v325_v10  ;;  %2212 = vmatprep.mubr.f32.mxu1 %v410_v7 }
  0xfe   :  { %v413_v12 = vmax.f32 %v331_v9, 0.0  ;;  %2213 = vmatmul.mubr.f32.gmra.mrb[16].mxu1 %v411_v6 }
  0xff   :  { %v412_v13 = vmax.f32 %v326_v11, 0.0  ;;  %v2140_v14 = vpop.f32.mrb[20].mxu0 }
 0x100   :  { %v341_v15 = vadd.f32 %v2140_v14, %v2850_v17  ;;  %v335_v16 = vpop.f32.mrb[21].mxu0 }
 0x101   :  { %v336_v18 = vadd.f32 %v2850_v17, %v335_v16  ;;  %2215 = vmatprep.mubr.f32.mxu1 %v412_v13 }
 0x102   :  { %v415_v19 = vmax.f32 %v341_v15, 0.0  ;;  %2216 = vmatmul.mubr.f32.gmra.mrb[18].mxu1 %v413_v12 }
 0x103   :  { %v414_v20 = vmax.f32 %v336_v18, 0.0  ;;  %v2143_v21 = vpop.f32.mrb[22].mxu0 }
 0x104   :  { %v351_v22 = vadd.f32 %v2143_v21, %v2850_v17  ;;  %v345_v23 = vpop.f32.mrb[23].mxu0 }
 0x105   :  { %v346_v24 = vadd.f32 %v2850_v17, %v345_v23  ;;  %2218 = vmatprep.mubr.f32.mxu1 %v414_v20 }
 0x106   :  { %v417_v25 = vmax.f32 %v351_v22, 0.0  ;;  %2219 = vmatmul.mubr.f32.gmra.mrb[20].mxu1 %v415_v19 }
 0x107   :  { %v416_v26 = vmax.f32 %v346_v24, 0.0  ;;  %v2146_v27 = vpop.f32.mrb[24].mxu0 }
 0x108   :  { %v361_v28 = vadd.f32 %v2146_v27, %v2850_v17  ;;  %v355_v29 = vpop.f32.mrb[25].mxu0 }
 0x109   :  { %v356_v30 = vadd.f32 %v2850_v17, %v355_v29  ;;  %2221 = vmatprep.mubr.f32.mxu1 %v416_v26 }
 0x10a   :  { %v419_v31 = vmax.f32 %v361_v28, 0.0  ;;  %2222 = vmatmul.mubr.f32.gmra.mrb[22].mxu1 %v417_v25 }
 0x10b   :  { %v418_v32 = vmax.f32 %v356_v30, 0.0  ;;  %v2149_v33 = vpop.f32.mrb[26].mxu0 }
 0x10c   :  { %v371_v34 = vadd.f32 %v2149_v33, %v2850_v17  ;;  %v365_v35 = vpop.f32.mrb[27].mxu0 }
 0x10d   :  { %v366_v36 = vadd.f32 %v2850_v17, %v365_v35  ;;  %2224 = vmatprep.mubr.f32.mxu1 %v418_v32 }
 0x10e   :  { %v421_v37 = vmax.f32 %v371_v34, 0.0  ;;  %2225 = vmatmul.mubr.f32.gmra.mrb[24].mxu1 %v419_v31 }
 0x10f   :  { %v420_v38 = vmax.f32 %v366_v36, 0.0  ;;  %v2152_v39 = vpop.f32.mrb[28].mxu0 }
 0x110   :  { %v381_v40 = vadd.f32 %v2152_v39, %v2850_v17  ;;  %v375_v41 = vpop.f32.mrb[29].mxu0 }
 0x111   :  { %2227 = vmatprep.mubr.f32.mxu1 %v420_v38  ;;  %v376_v42 = vadd.f32 %v2850_v17, %v375_v41 }
 0x112   :  { %2228 = vmatmul.mubr.f32.gmra.mrb[26].mxu1 %v421_v37  ;;  %v423_v43 = vmax.f32 %v381_v40, 0.0 }
 0x113   :  { %v422_v44 = vmax.f32 %v376_v42, 0.0  ;;  %v2155_v45 = vpop.f32.mrb[30].mxu0 }
 0x114   :  { %v391_v46 = vadd.f32 %v2155_v45, %v2850_v17  ;;  %v385_v47 = vpop.f32.mrb[31].mxu0 }
 0x115   :  { %2230 = vmatprep.mubr.f32.mxu1 %v422_v44  ;;  %v386_v48 = vadd.f32 %v2850_v17, %v385_v47 }
 0x116   :  { %v425_v49 = vmax.f32 %v391_v46, 0.0  ;;  %2231 = vmatmul.mubr.f32.gmra.mrb[28].mxu1 %v423_v43 }
 0x117   :  { %v424_v50 = vmax.f32 %v386_v48, 0.0 }
 0x119   :  { %2233 = vmatprep.mubr.f32.mxu1 %v424_v50 }
 0x11a   :  { %2234 = vmatmul.mubr.f32.gmra.mrb[30].mxu1 %v425_v49 }
 0x1b1   :  { %v2190_v52 = vpop.f32.mrb[0].mxu1 }
 0x1b2   :  { %v521_v53 = vadd.f32 %v2190_v52, %v2887_v51  ;;  %v515_v54 = vpop.f32.mrb[1].mxu1 }
 0x1b3   :  { %v516_v55 = vadd.f32 %v2887_v51, %v515_v54 }
 0x1b4   :  { %v675_v58 = vmax.f32 %v521_v53, 0.0 }
 0x1b5   :  { %v674_v56 = vmax.f32 %v516_v55, 0.0  ;;  %v2193_v57 = vpop.f32.mrb[2].mxu1 }
 0x1b6   :  { %v531_v17 = vadd.f32 %v2193_v57, %v2887_v51  ;;  %v525_v59 = vpop.f32.mrb[3].mxu1 }
 0x1b7   :  { %v526_v60 = vadd.f32 %v2887_v51, %v525_v59  ;;  %2268 = vmatprep.mubr.f32.mxu0 %v674_v56 }
 0x1b8   :  { %2269 = vmatmul.mubr.f32.vlgmr.msra.gmra.mrb[32].mxu0 %v675_v58  ;;  %v677_v63 = vmax.f32 %v531_v17, 0.0 }
 0x1b9   :  { %v676_v61 = vmax.f32 %v526_v60, 0.0  ;;  %v2196_v62 = vpop.f32.mrb[4].mxu1 }
 0x1ba   :  { %v541_v0 = vadd.f32 %v2196_v62, %v2887_v51  ;;  %v535_v1 = vpop.f32.mrb[5].mxu1 }
 0x1bb   :  { %v536_v2 = vadd.f32 %v2887_v51, %v535_v1  ;;  %2271 = vmatprep.mubr.f32.mxu0 %v676_v61 }
 0x1bc   :  { %2272 = vmatmul.mubr.f32.gmra.mrb[34].mxu0 %v677_v63  ;;  %v679_v5 = vmax.f32 %v541_v0, 0.0 }
 0x1bd   :  { %v678_v3 = vmax.f32 %v536_v2, 0.0  ;;  %v2199_v4 = vpop.f32.mrb[6].mxu1 }
 0x1be   :  { %v551_v6 = vadd.f32 %v2199_v4, %v2887_v51  ;;  %v545_v7 = vpop.f32.mrb[7].mxu1 }
 0x1bf   :  { %v546_v8 = vadd.f32 %v2887_v51, %v545_v7  ;;  %2274 = vmatprep.mubr.f32.mxu0 %v678_v3 }
 0x1c0   :  { %2275 = vmatmul.mubr.f32.gmra.mrb[36].mxu0 %v679_v5  ;;  %v681_v11 = vmax.f32 %v551_v6, 0.0 }
 0x1c1   :  { %v680_v9 = vmax.f32 %v546_v8, 0.0  ;;  %v2202_v10 = vpop.f32.mrb[8].mxu1 }
 0x1c2   :  { %v561_v12 = vadd.f32 %v2202_v10, %v2887_v51  ;;  %v555_v13 = vpop.f32.mrb[9].mxu1 }
 0x1c3   :  { %v556_v14 = vadd.f32 %v2887_v51, %v555_v13  ;;  %2277 = vmatprep.mubr.f32.mxu0 %v680_v9 }
 0x1c4   :  { %v683_v15 = vmax.f32 %v561_v12, 0.0  ;;  %2278 = vmatmul.mubr.f32.gmra.mrb[38].mxu0 %v681_v11 }
 0x1c5   :  { %v682_v16 = vmax.f32 %v556_v14, 0.0  ;;  %v2205_v18 = vpop.f32.mrb[10].mxu1 }
 0x1c6   :  { %v571_v19 = vadd.f32 %v2205_v18, %v2887_v51  ;;  %v565_v20 = vpop.f32.mrb[11].mxu1 }
 0x1c7   :  { %2280 = vmatprep.mubr.f32.mxu0 %v682_v16  ;;  %v566_v21 = vadd.f32 %v2887_v51, %v565_v20 }
 0x1c8   :  { %v685_v22 = vmax.f32 %v571_v19, 0.0  ;;  %2281 = vmatmul.mubr.f32.gmra.mrb[40].mxu0 %v683_v15 }
 0x1c9   :  { %v684_v23 = vmax.f32 %v566_v21, 0.0  ;;  %v2208_v24 = vpop.f32.mrb[12].mxu1  ;;  %v954_v21 = vlaneseq }
 0x1ca   :  { %v581_v25 = vadd.f32 %v2208_v24, %v2887_v51  ;;  %v575_v26 = vpop.f32.mrb[13].mxu1 }
 0x1cb   :  { %v576_v27 = vadd.f32 %v2887_v51, %v575_v26  ;;  %2283 = vmatprep.mubr.f32.mxu0 %v684_v23  ;;  %v2926_v23 = vld [vmem:[%s3787_s6] ss:$0 sm:$0xff] }
 0x1cc   :  { %v687_v28 = vmax.f32 %v581_v25, 0.0  ;;  %2284 = vmatmul.mubr.f32.gmra.mrb[42].mxu0 %v685_v22  ;;  %v2921_v22 = vand.u32 127, %v954_v21 }
 0x1cd   :  { %v686_v29 = vmax.f32 %v576_v27, 0.0  ;;  %v2211_v30 = vpop.f32.mrb[14].mxu1 }
 0x1ce   :  { %v591_v31 = vadd.f32 %v2211_v30, %v2887_v51  ;;  %v585_v32 = vpop.f32.mrb[15].mxu1  ;;  %vm956_vm1 = vcmp.lt.s32.totalorder %v2921_v22, 3 }
 0x1cf   :  { %v586_v33 = vadd.f32 %v2887_v51, %v585_v32  ;;  %2286 = vmatprep.mubr.f32.mxu0 %v686_v29 }
 0x1d0   :  { %v689_v34 = vmax.f32 %v591_v31, 0.0  ;;  %2287 = vmatmul.mubr.f32.gmra.mrb[44].mxu0 %v687_v28 }
 0x1d1   :  { %v688_v35 = vmax.f32 %v586_v33, 0.0  ;;  %v2214_v36 = vpop.f32.mrb[16].mxu1 }
 0x1d2   :  { %v601_v37 = vadd.f32 %v2214_v36, %v2887_v51  ;;  %v595_v38 = vpop.f32.mrb[17].mxu1 }
 0x1d3   :  { %v596_v39 = vadd.f32 %v2887_v51, %v595_v38  ;;  %2289 = vmatprep.mubr.f32.mxu0 %v688_v35 }
 0x1d4   :  { %v691_v40 = vmax.f32 %v601_v37, 0.0  ;;  %2290 = vmatmul.mubr.f32.gmra.mrb[46].mxu0 %v689_v34 }
 0x1d5   :  { %v690_v41 = vmax.f32 %v596_v39, 0.0  ;;  %v2217_v42 = vpop.f32.mrb[18].mxu1 }
 0x1d6   :  { %v611_v43 = vadd.f32 %v2217_v42, %v2887_v51  ;;  %v605_v44 = vpop.f32.mrb[19].mxu1 }
 0x1d7   :  { %v606_v45 = vadd.f32 %v2887_v51, %v605_v44  ;;  %2292 = vmatprep.mubr.f32.mxu0 %v690_v41 }
 0x1d8   :  { %v693_v46 = vmax.f32 %v611_v43, 0.0  ;;  %2293 = vmatmul.mubr.f32.gmra.mrb[48].mxu0 %v691_v40 }
 0x1d9   :  { %v692_v47 = vmax.f32 %v606_v45, 0.0  ;;  %v2220_v48 = vpop.f32.mrb[20].mxu1 }
 0x1da   :  { %v621_v49 = vadd.f32 %v2220_v48, %v2887_v51  ;;  %v615_v50 = vpop.f32.mrb[21].mxu1 }
 0x1db   :  { %v616_v52 = vadd.f32 %v2887_v51, %v615_v50  ;;  %2295 = vmatprep.mubr.f32.mxu0 %v692_v47 }
 0x1dc   :  { %v695_v53 = vmax.f32 %v621_v49, 0.0  ;;  %2296 = vmatmul.mubr.f32.gmra.mrb[50].mxu0 %v693_v46 }
 0x1dd   :  { %v694_v54 = vmax.f32 %v616_v52, 0.0  ;;  %v2223_v55 = vpop.f32.mrb[22].mxu1 }
 0x1de   :  { %v631_v56 = vadd.f32 %v2223_v55, %v2887_v51  ;;  %v625_v57 = vpop.f32.mrb[23].mxu1 }
 0x1df   :  { %v626_v58 = vadd.f32 %v2887_v51, %v625_v57  ;;  %2298 = vmatprep.mubr.f32.mxu0 %v694_v54 }
 0x1e0   :  { %v697_v17 = vmax.f32 %v631_v56, 0.0  ;;  %2299 = vmatmul.mubr.f32.gmra.mrb[52].mxu0 %v695_v53 }
 0x1e1   :  { %v696_v59 = vmax.f32 %v626_v58, 0.0  ;;  %v2226_v60 = vpop.f32.mrb[24].mxu1 }
 0x1e2   :  { %v641_v61 = vadd.f32 %v2226_v60, %v2887_v51  ;;  %v635_v62 = vpop.f32.mrb[25].mxu1 }
 0x1e3   :  { %v636_v63 = vadd.f32 %v2887_v51, %v635_v62  ;;  %2301 = vmatprep.mubr.f32.mxu0 %v696_v59 }
 0x1e4   :  { %v699_v0 = vmax.f32 %v641_v61, 0.0  ;;  %2302 = vmatmul.mubr.f32.gmra.mrb[54].mxu0 %v697_v17 }
 0x1e5   :  { %v698_v1 = vmax.f32 %v636_v63, 0.0  ;;  %v2229_v2 = vpop.f32.mrb[26].mxu1 }
 0x1e6   :  { %v651_v3 = vadd.f32 %v2229_v2, %v2887_v51  ;;  %v645_v4 = vpop.f32.mrb[27].mxu1 }
 0x1e7   :  { %v646_v5 = vadd.f32 %v2887_v51, %v645_v4  ;;  %2304 = vmatprep.mubr.f32.mxu0 %v698_v1 }
 0x1e8   :  { %v701_v6 = vmax.f32 %v651_v3, 0.0  ;;  %2305 = vmatmul.mubr.f32.gmra.mrb[56].mxu0 %v699_v0 }
 0x1e9   :  { %v700_v7 = vmax.f32 %v646_v5, 0.0  ;;  %v2232_v8 = vpop.f32.mrb[28].mxu1 }
 0x1ea   :  { %v661_v9 = vadd.f32 %v2232_v8, %v2887_v51  ;;  %v655_v10 = vpop.f32.mrb[29].mxu1 }
 0x1eb   :  { %2307 = vmatprep.mubr.f32.mxu0 %v700_v7  ;;  %v656_v11 = vadd.f32 %v2887_v51, %v655_v10 }
 0x1ec   :  { %2308 = vmatmul.mubr.f32.gmra.mrb[58].mxu0 %v701_v6  ;;  %v703_v12 = vmax.f32 %v661_v9, 0.0 }
 0x1ed   :  { %v702_v13 = vmax.f32 %v656_v11, 0.0  ;;  %v2235_v14 = vpop.f32.mrb[30].mxu1 }
 0x1ee   :  { %v671_v15 = vadd.f32 %v2235_v14, %v2887_v51  ;;  %v665_v16 = vpop.f32.mrb[31].mxu1 }
 0x1ef   :  { %2310 = vmatprep.mubr.f32.mxu0 %v702_v13  ;;  %v666_v18 = vadd.f32 %v2887_v51, %v665_v16 }
 0x1f0   :  { %v705_v19 = vmax.f32 %v671_v15, 0.0  ;;  %2311 = vmatmul.mubr.f32.gmra.mrb[60].mxu0 %v703_v12 }
 0x1f1   :  { %v704_v20 = vmax.f32 %v666_v18, 0.0 }
 0x1f3   :  { %2313 = vmatprep.mubr.f32.mxu0 %v704_v20 }
 0x1f4   :  { %2314 = vmatmul.mubr.f32.gmra.mrb[62].mxu0 %v705_v19 }
 0x28b   :  { %v2270_v24 = vpop.f32.mrb[32].mxu0 }
 0x28c   :  { %v795_v25 = vpop.f32.mrb[33].mxu0  ;;  %v2956_v40 = vadd.f32 %v2270_v24, %v2926_v23 }
 0x28d   :  { %v2930_v26 = vadd.f32 %v2926_v23, %v795_v25 }
 0x28e   :  { %v960_v53 = vsel %vm956_vm1, %v2956_v40, -inf }
 0x28f   :  { %v2932_v51 = vpop.f32.mrb[34].mxu0  ;;  %v959_v27 = vsel %vm956_vm1, %v2930_v26, -inf  ;;  %v995_v57 = vsel %vm991_vm2, %v960_v53, -inf }
 0x290   :  { %v2937_v28 = vpop.f32.mrb[35].mxu0  ;;  %v992_v29 = vsel %vm991_vm2, %v959_v27, -inf }
 0x291   :  { %993 = vmax.xlane.f32.xlu0 %v992_v29 }
 0x293   :  { %v2276_v30 = vpop.f32.mrb[36].mxu0 }
 0x294   :  { %v2941_v31 = vadd.f32 %v2276_v30, %v2926_v23  ;;  %v2943_v32 = vpop.f32.mrb[37].mxu0 }
 0x296   :  { %3807 = vst [vmem:[#allocation2_spill] sm:$0xff] %v2941_v31 }
 0x297   :  { %v2279_v33 = vpop.f32.mrb[38].mxu0 }
 0x298   :  { %v2946_v34 = vadd.f32 %v2279_v33, %v2926_v23  ;;  %v825_v35 = vpop.f32.mrb[39].mxu0 }
 0x299   :  { %v2949_v36 = vadd.f32 %v2926_v23, %v825_v35 }
 0x29a   :  { %v966_v37 = vsel %vm956_vm1, %v2946_v34, -inf }
 0x29b   :  { %v2282_v38 = vpop.f32.mrb[40].mxu0  ;;  %v1013_v39 = vsel %vm991_vm2, %v966_v37, -inf  ;;  %v965_v43 = vsel %vm956_vm1, %v2949_v36, -inf }
 0x29c   :  { %v2959_v41 = vadd.f32 %v2282_v38, %v2926_v23  ;;  %v835_v42 = vpop.f32.mrb[41].mxu0  ;;  %1014 = vmax.xlane.f32.xlu0 %v1013_v39  ;;  %v1010_v47 = vsel %vm991_vm2, %v965_v43, -inf }
 0x29d   :  { %v2965_v44 = vadd.f32 %v2926_v23, %v835_v42 }
 0x29e   :  { %v968_v45 = vsel %vm956_vm1, %v2959_v41, -inf }
 0x29f   :  { %v1019_v46 = vsel %vm991_vm2, %v968_v45, -inf  ;;  %v2285_v48 = vpop.f32.mrb[42].mxu0  ;;  %v967_v52 = vsel %vm956_vm1, %v2965_v44, -inf }
 0x2a0   :  { %1020 = vmax.xlane.f32.xlu1 %v1019_v46  ;;  %1011 = vmax.xlane.f32.xlu0 %v1010_v47  ;;  %v2973_v49 = vadd.f32 %v2285_v48, %v2926_v23  ;;  %v845_v50 = vpop.f32.mrb[43].mxu0  ;;  %v1016_v56 = vsel %vm991_vm2, %v967_v52, -inf }
 0x2a1   :  { %v2982_v54 = vadd.f32 %v2926_v23, %v845_v50 }
 0x2a2   :  { %v970_v55 = vsel %vm956_vm1, %v2973_v49, -inf }
 0x2a3   :  { %v2288_v58 = vpop.f32.mrb[44].mxu0  ;;  %v969_v17 = vsel %vm956_vm1, %v2982_v54, -inf  ;;  %v1025_v62 = vsel %vm991_vm2, %v970_v55, -inf }
 0x2a4   :  { %1017 = vmax.xlane.f32.xlu1 %v1016_v56  ;;  %996 = vmax.xlane.f32.xlu0 %v995_v57  ;;  %v2993_v59 = vadd.f32 %v2288_v58, %v2926_v23  ;;  %v855_v60 = vpop.f32.mrb[45].mxu0  ;;  %v1022_v63 = vsel %vm991_vm2, %v969_v17, -inf }
 0x2a5   :  { %v2996_v61 = vadd.f32 %v2926_v23, %v855_v60 }
 0x2a6   :  { %v972_v0 = vsel %vm956_vm1, %v2993_v59, -inf }
 0x2a7   :  { %v2291_v1 = vpop.f32.mrb[46].mxu0  ;;  %v971_v2 = vsel %vm956_vm1, %v2996_v61, -inf  ;;  %v1031_v6 = vsel %vm991_vm2, %v972_v0, -inf }
 0x2a8   :  { %1026 = vmax.xlane.f32.xlu1 %v1025_v62  ;;  %1023 = vmax.xlane.f32.xlu0 %v1022_v63  ;;  %v3007_v3 = vadd.f32 %v2291_v1, %v2926_v23  ;;  %v865_v4 = vpop.f32.mrb[47].mxu0  ;;  %v1028_v7 = vsel %vm991_vm2, %v971_v2, -inf }
 0x2a9   :  { %v3010_v5 = vadd.f32 %v2926_v23, %v865_v4  ;;  %v3092_v4 = vadd.f32 %v2926_v23, %v2937_v28 }
 0x2aa   :  { %v974_v8 = vsel %vm956_vm1, %v3007_v3, -inf }
 0x2ab   :  { %v2294_v9 = vpop.f32.mrb[48].mxu0  ;;  %v973_v10 = vsel %vm956_vm1, %v3010_v5, -inf  ;;  %v1037_v14 = vsel %vm991_vm2, %v974_v8, -inf  ;;  %3814 = vst [vmem:[#allocation9_spill] sm:$0xff] %v3092_v4 }
 0x2ac   :  { %1032 = vmax.xlane.f32.xlu1 %v1031_v6  ;;  %1029 = vmax.xlane.f32.xlu0 %v1028_v7  ;;  %v3021_v11 = vadd.f32 %v2294_v9, %v2926_v23  ;;  %v875_v12 = vpop.f32.mrb[49].mxu0  ;;  %v1034_v15 = vsel %vm991_vm2, %v973_v10, -inf }
 0x2ad   :  { %v3024_v13 = vadd.f32 %v2926_v23, %v875_v12 }
 0x2ae   :  { %v976_v16 = vsel %vm956_vm1, %v3021_v11, -inf }
 0x2af   :  { %v2297_v18 = vpop.f32.mrb[50].mxu0  ;;  %v975_v19 = vsel %vm956_vm1, %v3024_v13, -inf  ;;  %v1043_v25 = vsel %vm991_vm2, %v976_v16, -inf }
 0x2b0   :  { %1038 = vmax.xlane.f32.xlu1 %v1037_v14  ;;  %1035 = vmax.xlane.f32.xlu0 %v1034_v15  ;;  %v3035_v20 = vadd.f32 %v2297_v18, %v2926_v23  ;;  %v885_v21 = vpop.f32.mrb[51].mxu0  ;;  %v1040_v27 = vsel %vm991_vm2, %v975_v19, -inf  ;;  %v3104_v14 = vadd.f32 %v2932_v51, %v2926_v23  ;;  %v961_v15 = vsel %vm956_vm1, %v3092_v4, -inf }
 0x2b1   :  { %v3038_v24 = vadd.f32 %v2926_v23, %v885_v21  ;;  %v998_v51 = vsel %vm991_vm2, %v961_v15, -inf }
 0x2b2   :  { %v978_v29 = vsel %vm956_vm1, %v3035_v20, -inf  ;;  %3816 = vst [vmem:[#allocation11_spill] sm:$0xff] %v3104_v14 }
 0x2b3   :  { %v2300_v30 = vpop.f32.mrb[52].mxu0  ;;  %v977_v33 = vsel %vm956_vm1, %v3038_v24, -inf  ;;  %v1049_v39 = vsel %vm991_vm2, %v978_v29, -inf }
 0x2b4   :  { %1044 = vmax.xlane.f32.xlu1 %v1043_v25  ;;  %1041 = vmax.xlane.f32.xlu0 %v1040_v27  ;;  %v3049_v35 = vadd.f32 %v2300_v30, %v2926_v23  ;;  %v895_v37 = vpop.f32.mrb[53].mxu0  ;;  %v1046_v42 = vsel %vm991_vm2, %v977_v33, -inf  ;;  %v3122_v27 = vadd.f32 %v2926_v23, %v2943_v32  ;;  %v962_v30 = vsel %vm956_vm1, %v3104_v14, -inf }
 0x2b5   :  { %v3052_v38 = vadd.f32 %v2926_v23, %v895_v37 }
 0x2b6   :  { %3808 = vst [vmem:[#allocation3_spill] sm:$0xff] %v3049_v35  ;;  %v980_v43 = vsel %vm956_vm1, %v3049_v35, -inf  ;;  %3820 = vst [vmem:[#allocation15_spill] sm:$0xff] %v3122_v27 }
 0x2b7   :  { %3809 = vst [vmem:[#allocation4_spill] sm:$0xff] %v3052_v38  ;;  %v2303_v45 = vpop.f32.mrb[54].mxu0  ;;  %v979_v46 = vsel %vm956_vm1, %v3052_v38, -inf  ;;  %v1055_v52 = vsel %vm991_vm2, %v980_v43, -inf  ;;  %v1001_v43 = vsel %vm991_vm2, %v962_v30, -inf }
 0x2b8   :  { %1050 = vmax.xlane.f32.xlu1 %v1049_v39  ;;  %1047 = vmax.xlane.f32.xlu0 %v1046_v42  ;;  %v3063_v47 = vadd.f32 %v2303_v45, %v2926_v23  ;;  %v905_v48 = vpop.f32.mrb[55].mxu0  ;;  %v1052_v53 = vsel %vm991_vm2, %v979_v46, -inf  ;;  %v963_v45 = vsel %vm956_vm1, %v3122_v27, -inf }
 0x2b9   :  { %v3066_v50 = vadd.f32 %v2926_v23, %v905_v48  ;;  %v1004_v48 = vsel %vm991_vm2, %v963_v45, -inf }
 0x2ba   :  { %3810 = vst [vmem:[#allocation5_spill] sm:$0xff] %v3063_v47  ;;  %v982_v55 = vsel %vm956_vm1, %v3063_v47, -inf }
 0x2bb   :  { %3811 = vst [vmem:[#allocation6_spill] sm:$0xff] %v3066_v50  ;;  %v2306_v56 = vpop.f32.mrb[56].mxu0  ;;  %v981_v57 = vsel %vm956_vm1, %v3066_v50, -inf  ;;  %v1061_v62 = vsel %vm991_vm2, %v982_v55, -inf }
 0x2bc   :  { %1056 = vmax.xlane.f32.xlu1 %v1055_v52  ;;  %1053 = vmax.xlane.f32.xlu0 %v1052_v53  ;;  %v3077_v58 = vadd.f32 %v2306_v56, %v2926_v23  ;;  %v915_v17 = vpop.f32.mrb[57].mxu0  ;;  %v1058_v63 = vsel %vm991_vm2, %v981_v57, -inf  ;;  %v964_v52 = vsel %vm956_vm1, %v2941_v31, -inf }
 0x2bd   :  { %v3080_v60 = vadd.f32 %v2926_v23, %v915_v17  ;;  %v1007_v56 = vsel %vm991_vm2, %v964_v52, -inf }
 0x2be   :  { %3812 = vst [vmem:[#allocation7_spill] sm:$0xff] %v3077_v58  ;;  %v984_v0 = vsel %vm956_vm1, %v3077_v58, -inf }
 0x2bf   :  { %3813 = vst [vmem:[#allocation8_spill] sm:$0xff] %v3080_v60  ;;  %v2309_v1 = vpop.f32.mrb[58].mxu0  ;;  %v983_v2 = vsel %vm956_vm1, %v3080_v60, -inf  ;;  %v1067_v8 = vsel %vm991_vm2, %v984_v0, -inf  ;;  %v1480_v0 = vld [vmem:[%s3788_s8 + $0x8] sm:$0x7f] }
 0x2c0   :  { %1062 = vmax.xlane.f32.xlu1 %v1061_v62  ;;  %1059 = vmax.xlane.f32.xlu0 %v1058_v63  ;;  %v3095_v6 = vadd.f32 %v2309_v1, %v2926_v23  ;;  %v925_v7 = vpop.f32.mrb[59].mxu0  ;;  %v1064_v9 = vsel %vm991_vm2, %v983_v2, -inf  ;;  %v1479_v63 = vld [vmem:[%s3788_s8] sm:$0xff] }
 0x2c1   :  { %v3107_v28 = vadd.f32 %v2926_v23, %v925_v7  ;;  %v2432_v1 = vpack.c.bf16 %v1480_v0, %v1479_v63 }
 0x2c2   :  { %3815 = vst [vmem:[#allocation10_spill] sm:$0xff] %v3095_v6  ;;  %v986_v10 = vsel %vm956_vm1, %v3095_v6, -inf }
 0x2c3   :  { %v2312_v12 = vpop.f32.mrb[60].mxu0  ;;  %3817 = vst [vmem:[#allocation12_spill] sm:$0xff] %v3107_v28  ;;  %v1073_v18 = vsel %vm991_vm2, %v986_v10, -inf  ;;  %v985_v29 = vsel %vm956_vm1, %v3107_v28, -inf  ;;  %2438 = vmatprep.subr.msk.bf16.mxu1 %vm2433_vm5, %v2432_v1  ;;  %2434 = vmatprep.subr.msk.bf16.mxu0 %vm2433_vm5, %v2432_v1 }
 0x2c4   :  { %1068 = vmax.xlane.f32.xlu1 %v1067_v8  ;;  %1065 = vmax.xlane.f32.xlu0 %v1064_v9  ;;  %v935_v16 = vpop.f32.mrb[61].mxu0  ;;  %v3117_v21 = vadd.f32 %v2312_v12, %v2926_v23  ;;  %v1070_v42 = vsel %vm991_vm2, %v985_v29, -inf }
 0x2c5   :  { %v3114_v19 = vadd.f32 %v2926_v23, %v935_v16  ;;  %2439 = vmatpush3.bf16.msk.msra.mxu1 %vm2433_vm5, %v2432_v1  ;;  %2437 = vmatpush3.bf16.msk.msra.mxu0 %vm2433_vm5, %v2432_v1 }
 0x2c6   :  { %3819 = vst [vmem:[#allocation14_spill] sm:$0xff] %v3117_v21  ;;  %v988_v32 = vsel %vm956_vm1, %v3117_v21, -inf }
 0x2c7   :  { %3818 = vst [vmem:[#allocation13_spill] sm:$0xff] %v3114_v19  ;;  %v2315_v25 = vpop.f32.mrb[62].mxu0  ;;  %v1079_v46 = vsel %vm991_vm2, %v988_v32, -inf }
 0x2c8   :  { %1074 = vmax.xlane.f32.xlu1 %v1073_v18  ;;  %999 = vmax.xlane.f32.xlu0 %v998_v51  ;;  %v3131_v33 = vadd.f32 %v2315_v25, %v2926_v23  ;;  %v945_v37 = vpop.f32.mrb[63].mxu0 }
 0x2c9   :  { %v3134_v39 = vadd.f32 %v2926_v23, %v945_v37  ;;  %v987_v23 = vsel %vm956_vm1, %v3114_v19, -inf }
 0x2ca   :  { %3821 = vst [vmem:[#allocation16_spill] sm:$0xff] %v3131_v33  ;;  %v1076_v55 = vsel %vm991_vm2, %v987_v23, -inf  ;;  %v990_v17 = vsel %vm956_vm1, %v3131_v33, -inf }
 0x2cb   :  { %3822 = vst [vmem:[#allocation17_spill] sm:$0xff] %v3134_v39  ;;  %v989_v53 = vsel %vm956_vm1, %v3134_v39, -inf  ;;  %v1085_v62 = vsel %vm991_vm2, %v990_v17, -inf }
 0x2cc   :  { %1071 = vmax.xlane.f32.xlu1 %v1070_v42  ;;  %1002 = vmax.xlane.f32.xlu0 %v1001_v43  ;;  %v1082_v57 = vsel %vm991_vm2, %v989_v53, -inf }
 0x2d0   :  { %1080 = vmax.xlane.f32.xlu1 %v1079_v46  ;;  %1005 = vmax.xlane.f32.xlu0 %v1004_v48 }
 0x2d4   :  { %1077 = vmax.xlane.f32.xlu1 %v1076_v55  ;;  %1008 = vmax.xlane.f32.xlu0 %v1007_v56 }
 0x2d8   :  { %1083 = vmax.xlane.f32.xlu1 %v1082_v57 }
 0x2dc   :  { %1086 = vmax.xlane.f32.xlu1 %v1085_v62 }
 0x31e   :  { %v994_v2 = vpop.xlane.xlu0 %993 }
 0x31f   :  { %v1088_v10 = vsel %vm956_vm1, %v994_v2, 0.0 }
 0x320   :  { %v1120_v51 = vsub.f32 %v2930_v26, %v1088_v10 }
 0x322   :  { %v1152_v43 = vmul.f32 1.442695, %v1120_v51 }
 0x329   :  { %v1015_v7 = vpop.xlane.xlu0 %1014 }
 0x32a   :  { %v1095_v8 = vsel %vm956_vm1, %v1015_v7, 0.0 }
 0x32b   :  { %v1127_v9 = vsub.f32 %v2946_v34, %v1095_v8 }
 0x32d   :  { %v1166_v12 = vmul.f32 1.442695, %v1127_v9  ;;  %v1021_v15 = vpop.xlane.xlu1 %1020  ;;  %v1012_v16 = vpop.xlane.xlu0 %1011 }
 0x32e   :  { %v1097_v18 = vsel %vm956_vm1, %v1021_v15, 0.0  ;;  %v1094_v30 = vsel %vm956_vm1, %v1012_v16, 0.0 }
 0x32f   :  { %2441 = vpow2.f32 %v1166_v12  ;;  %v1129_v25 = vsub.f32 %v2959_v41, %v1097_v18  ;;  %v1126_v46 = vsub.f32 %v2949_v36, %v1094_v30 }
 0x331   :  { %v1170_v29 = vmul.f32 1.442695, %v1129_v25  ;;  %v1018_v37 = vpop.xlane.xlu1 %1017  ;;  %v997_v32 = vpop.xlane.xlu0 %996  ;;  %v1164_v57 = vmul.f32 1.442695, %v1126_v46 }
 0x332   :  { %v1089_v42 = vsel %vm956_vm1, %v997_v32, 0.0  ;;  %v1096_v48 = vsel %vm956_vm1, %v1018_v37, 0.0 }
 0x333   :  { %2443 = vpow2.f32 %v1170_v29  ;;  %v1121_v45 = vsub.f32 %v2956_v40, %v1089_v42  ;;  %v1128_v17 = vsub.f32 %v2965_v44, %v1096_v48 }
 0x334   :  { %2445 = vpow2.f32 %v1152_v43 }
 0x335   :  { %v1154_v23 = vmul.f32 1.442695, %v1121_v45  ;;  %v1027_v52 = vpop.xlane.xlu1 %1026  ;;  %v1024_v53 = vpop.xlane.xlu0 %1023  ;;  %v1168_v12 = vmul.f32 1.442695, %v1128_v17 }
 0x336   :  { %v1099_v55 = vsel %vm956_vm1, %v1027_v52, 0.0  ;;  %v1098_v0 = vsel %vm956_vm1, %v1024_v53, 0.0 }
 0x337   :  { %v1131_v56 = vsub.f32 %v2973_v49, %v1099_v55  ;;  %2447 = vpow2.f32 %v1154_v23  ;;  %v1130_v15 = vsub.f32 %v2982_v54, %v1098_v0 }
 0x339   :  { %v3189_v62 = vpop.eup %2441  ;;  %v1174_v63 = vmul.f32 1.442695, %v1131_v56  ;;  %v1033_v1 = vpop.xlane.xlu1 %1032  ;;  %v1172_v43 = vmul.f32 1.442695, %v1130_v15 }
 0x33a   :  { %v1030_v2 = vpop.xlane.xlu0 %1029  ;;  %v1101_v7 = vsel %vm956_vm1, %v1033_v1, 0.0  ;;  %v1223_v8 = vsel %vm956_vm1, %v3189_v62, 0.0 }
 0x33b   :  { %2449 = vpow2.f32 %v1174_v63  ;;  %v1133_v9 = vsub.f32 %v2993_v59, %v1101_v7  ;;  %v1269_v10 = vsel %vm991_vm2, %v1223_v8, 0.0  ;;  %v1100_v51 = vsel %vm956_vm1, %v1030_v2, 0.0 }
 0x33c   :  { %2451 = vpow2.f32 %v1164_v57  ;;  %1270 = vadd.xlane.f32.xlu1 %v1269_v10  ;;  %v1132_v45 = vsub.f32 %v2996_v61, %v1100_v51 }
 0x33d   :  { %v3201_v16 = vpop.eup %2443  ;;  %v1178_v18 = vmul.f32 1.442695, %v1133_v9  ;;  %v1039_v25 = vpop.xlane.xlu1 %1038 }
 0x33e   :  { %v1036_v29 = vpop.xlane.xlu0 %1035  ;;  %v1103_v30 = vsel %vm956_vm1, %v1039_v25, 0.0  ;;  %v1225_v37 = vsel %vm956_vm1, %v3201_v16, 0.0  ;;  %v3213_v46 = vpop.eup %2445  ;;  %v1176_v63 = vmul.f32 1.442695, %v1132_v45 }
 0x33f   :  { %2453 = vpow2.f32 %v1178_v18  ;;  %v1135_v32 = vsub.f32 %v3007_v3, %v1103_v30  ;;  %v1275_v42 = vsel %vm991_vm2, %v1225_v37, 0.0  ;;  %v1102_v23 = vsel %vm956_vm1, %v1036_v29, 0.0 }
 0x340   :  { %2455 = vpow2.f32 %v1168_v12  ;;  %1276 = vadd.xlane.f32.xlu1 %v1275_v42  ;;  %v1134_v0 = vsub.f32 %v3010_v5, %v1102_v23  ;;  %v1216_v12 = vsel %vm956_vm1, %v3213_v46, 0.0 }
 0x341   :  { %v1182_v48 = vmul.f32 1.442695, %v1135_v32  ;;  %v1045_v52 = vpop.xlane.xlu1 %1044  ;;  %v3217_v55 = vpop.eup %2447  ;;  %v1248_v32 = vsel %vm991_vm2, %v1216_v12, 0.0 }
 0x342   :  { %v1042_v53 = vpop.xlane.xlu0 %1041  ;;  %v1105_v56 = vsel %vm956_vm1, %v1045_v52, 0.0  ;;  %v1217_v17 = vsel %vm956_vm1, %v3217_v55, 0.0  ;;  %v1180_v30 = vmul.f32 1.442695, %v1134_v0 }
 0x343   :  { %2457 = vpow2.f32 %v1182_v48  ;;  %v1137_v57 = vsub.f32 %v3021_v11, %v1105_v56  ;;  %v1251_v1 = vsel %vm991_vm2, %v1217_v17, 0.0  ;;  %v1104_v8 = vsel %vm956_vm1, %v1042_v53, 0.0 }
 0x344   :  { %2459 = vpow2.f32 %v1172_v43  ;;  %1252 = vadd.xlane.f32.xlu0 %v1251_v1  ;;  %v1136_v37 = vsub.f32 %v3024_v13, %v1104_v8 }
 0x345   :  { %v3227_v2 = vpop.eup %2449  ;;  %v1186_v7 = vmul.f32 1.442695, %v1137_v57  ;;  %v1051_v9 = vpop.xlane.xlu1 %1050 }
 0x346   :  { %v1048_v10 = vpop.xlane.xlu0 %1047  ;;  %v3234_v15 = vpop.eup %2451  ;;  %v1107_v18 = vsel %vm956_vm1, %v1051_v9, 0.0  ;;  %v1227_v51 = vsel %vm956_vm1, %v3227_v2, 0.0  ;;  %v1184_v0 = vmul.f32 1.442695, %v1136_v37 }
 0x347   :  { %2461 = vpow2.f32 %v1186_v7  ;;  %v1139_v25 = vsub.f32 %v3035_v20, %v1107_v18  ;;  %v1281_v29 = vsel %vm991_vm2, %v1227_v51, 0.0  ;;  %v1106_v45 = vsel %vm956_vm1, %v1048_v10, 0.0 }
 0x348   :  { %2463 = vpow2.f32 %v1176_v63  ;;  %1282 = vadd.xlane.f32.xlu1 %v1281_v29  ;;  %1249 = vadd.xlane.f32.xlu0 %v1248_v32  ;;  %v1222_v52 = vsel %vm956_vm1, %v3234_v15, 0.0  ;;  %v1138_v1 = vsub.f32 %v3038_v24, %v1106_v45 }
 0x349   :  { %v3245_v42 = vpop.eup %2453  ;;  %v1190_v43 = vmul.f32 1.442695, %v1139_v25  ;;  %v1057_v48 = vpop.xlane.xlu1 %1056  ;;  %v1266_v7 = vsel %vm991_vm2, %v1222_v52, 0.0 }
 0x34a   :  { %v1054_v23 = vpop.xlane.xlu0 %1053  ;;  %v3252_v53 = vpop.eup %2455  ;;  %v1109_v56 = vsel %vm956_vm1, %v1057_v48, 0.0  ;;  %v1229_v57 = vsel %vm956_vm1, %v3245_v42, 0.0 }
 0x34b   :  { %2465 = vpow2.f32 %v1190_v43  ;;  %v1141_v17 = vsub.f32 %v3049_v35, %v1109_v56  ;;  %v1287_v63 = vsel %vm991_vm2, %v1229_v57, 0.0  ;;  %v1108_v10 = vsel %vm956_vm1, %v1054_v23, 0.0 }
 0x34c   :  { %2467 = vpow2.f32 %v1180_v30  ;;  %1288 = vadd.xlane.f32.xlu1 %v1287_v63  ;;  %1267 = vadd.xlane.f32.xlu0 %v1266_v7  ;;  %v1224_v51 = vsel %vm956_vm1, %v3252_v53, 0.0  ;;  %v1188_v43 = vmul.f32 1.442695, %v1138_v1  ;;  %v1140_v45 = vsub.f32 %v3052_v38, %v1108_v10 }
 0x34d   :  { %v3263_v8 = vpop.eup %2457  ;;  %v1194_v9 = vmul.f32 1.442695, %v1141_v17  ;;  %v1063_v12 = vpop.xlane.xlu1 %1062  ;;  %v1272_v48 = vsel %vm991_vm2, %v1224_v51, 0.0 }
 0x34e   :  { %v1060_v18 = vpop.xlane.xlu0 %1059  ;;  %v3270_v25 = vpop.eup %2459  ;;  %v1111_v29 = vsel %vm956_vm1, %v1063_v12, 0.0  ;;  %v1231_v30 = vsel %vm956_vm1, %v3263_v8, 0.0  ;;  %v1192_v12 = vmul.f32 1.442695, %v1140_v45 }
 0x34f   :  { %2469 = vpow2.f32 %v1194_v9  ;;  %v1143_v37 = vsub.f32 %v3063_v47, %v1111_v29  ;;  %v1293_v32 = vsel %vm991_vm2, %v1231_v30, 0.0  ;;  %v1110_v56 = vsel %vm956_vm1, %v1060_v18, 0.0 }
 0x350   :  { %2471 = vpow2.f32 %v1184_v0  ;;  %1294 = vadd.xlane.f32.xlu1 %v1293_v32  ;;  %1273 = vadd.xlane.f32.xlu0 %v1272_v48  ;;  %v1226_v63 = vsel %vm956_vm1, %v3270_v25, 0.0  ;;  %v1142_v18 = vsub.f32 %v3066_v50, %v1110_v56 }
 0x351   :  { %v3281_v23 = vpop.eup %2461  ;;  %v1198_v52 = vmul.f32 1.442695, %v1143_v37  ;;  %v1069_v57 = vpop.xlane.xlu1 %1068  ;;  %v1278_v51 = vsel %vm991_vm2, %v1226_v63, 0.0 }
 0x352   :  { %v1066_v17 = vpop.xlane.xlu0 %1065  ;;  %v3288_v0 = vpop.eup %2463  ;;  %v1113_v1 = vsel %vm956_vm1, %v1069_v57, 0.0  ;;  %v1233_v7 = vsel %vm956_vm1, %v3281_v23, 0.0  ;;  %v1196_v63 = vmul.f32 1.442695, %v1142_v18 }
 0x353   :  { %2473 = vpow2.f32 %v1198_v52  ;;  %v1145_v9 = vsub.f32 %v3077_v58, %v1113_v1  ;;  %v1299_v10 = vsel %vm991_vm2, %v1233_v7, 0.0  ;;  %v1112_v37 = vsel %vm956_vm1, %v1066_v17, 0.0 }
 0x354   :  { %2475 = vpow2.f32 %v1188_v43  ;;  %1300 = vadd.xlane.f32.xlu1 %v1299_v10  ;;  %1279 = vadd.xlane.f32.xlu0 %v1278_v51  ;;  %v1228_v52 = vsel %vm956_vm1, %v3288_v0, 0.0  ;;  %v1144_v1 = vsub.f32 %v3080_v60, %v1112_v37 }
 0x355   :  { %v3299_v29 = vpop.eup %2465  ;;  %v1202_v30 = vmul.f32 1.442695, %v1145_v9  ;;  %v1075_v32 = vpop.xlane.xlu1 %1074  ;;  %v1284_v7 = vsel %vm991_vm2, %v1228_v52, 0.0 }
 0x356   :  { %v1000_v48 = vpop.xlane.xlu0 %999  ;;  %v3306_v43 = vpop.eup %2467  ;;  %v1115_v45 = vsel %vm956_vm1, %v1075_v32, 0.0  ;;  %v1235_v56 = vsel %vm956_vm1, %v3299_v29, 0.0 }
 0x357   :  { %2477 = vpow2.f32 %v1202_v30  ;;  %v1147_v57 = vsub.f32 %v3095_v6, %v1115_v45  ;;  %v1305_v17 = vsel %vm991_vm2, %v1235_v56, 0.0  ;;  %v1090_v51 = vsel %vm956_vm1, %v1000_v48, 0.0 }
 0x358   :  { %2479 = vpow2.f32 %v1192_v12  ;;  %1306 = vadd.xlane.f32.xlu1 %v1305_v17  ;;  %1285 = vadd.xlane.f32.xlu0 %v1284_v7  ;;  %v1230_v45 = vsel %vm956_vm1, %v3306_v43, 0.0  ;;  %v1200_v56 = vmul.f32 1.442695, %v1144_v1 }
 0x359   :  { %v3317_v9 = vpop.eup %2469  ;;  %v1206_v10 = vmul.f32 1.442695, %v1147_v57  ;;  %v1072_v32 = vpop.xlane.xlu1 %1071  ;;  %v1122_v57 = vsub.f32 %v3092_v4, %v1090_v51  ;;  %v1290_v17 = vsel %vm991_vm2, %v1230_v45, 0.0 }
 0x35a   :  { %v1003_v30 = vpop.xlane.xlu0 %1002  ;;  %v3324_v12 = vpop.eup %2471  ;;  %v1114_v18 = vsel %vm956_vm1, %v1072_v32, 0.0  ;;  %v1237_v37 = vsel %vm956_vm1, %v3317_v9, 0.0 }
 0x35b   :  { %2481 = vpow2.f32 %v1206_v10  ;;  %v1146_v52 = vsub.f32 %v3107_v28, %v1114_v18  ;;  %v1311_v48 = vsel %vm991_vm2, %v1237_v37, 0.0  ;;  %v1091_v32 = vsel %vm956_vm1, %v1003_v30, 0.0 }
 0x35c   :  { %2483 = vpow2.f32 %v1196_v63  ;;  %1312 = vadd.xlane.f32.xlu1 %v1311_v48  ;;  %1291 = vadd.xlane.f32.xlu0 %v1290_v17  ;;  %v1232_v18 = vsel %vm956_vm1, %v3324_v12, 0.0  ;;  %v1156_v37 = vmul.f32 1.442695, %v1122_v57 }
 0x35d   :  { %v3335_v7 = vpop.eup %2473  ;;  %v1204_v6 = vmul.f32 1.442695, %v1146_v52  ;;  %v1081_v60 = vpop.xlane.xlu1 %1080  ;;  %v1123_v52 = vsub.f32 %v3104_v14, %v1091_v32  ;;  %v1296_v48 = vsel %vm991_vm2, %v1232_v18, 0.0 }
 0x35e   :  { %v1006_v10 = vpop.xlane.xlu0 %1005  ;;  %v3342_v63 = vpop.eup %2475  ;;  %v1117_v1 = vsel %vm956_vm1, %v1081_v60, 0.0  ;;  %v1239_v51 = vsel %vm956_vm1, %v3335_v7, 0.0 }
 0x35f   :  { %2485 = vpow2.f32 %v1204_v6  ;;  %v1149_v45 = vsub.f32 %v3117_v21, %v1117_v1  ;;  %v1317_v30 = vsel %vm991_vm2, %v1239_v51, 0.0  ;;  %v1092_v60 = vsel %vm956_vm1, %v1006_v10, 0.0 }
 0x360   :  { %2487 = vpow2.f32 %v1200_v56  ;;  %1318 = vadd.xlane.f32.xlu1 %v1317_v30  ;;  %1297 = vadd.xlane.f32.xlu0 %v1296_v48  ;;  %v1234_v6 = vsel %vm956_vm1, %v3342_v63, 0.0  ;;  %v1158_v51 = vmul.f32 1.442695, %v1123_v52 }
 0x361   :  { %v3353_v17 = vpop.eup %2477  ;;  %v1210_v4 = vmul.f32 1.442695, %v1149_v45  ;;  %v1078_v28 = vpop.xlane.xlu1 %1077  ;;  %v1124_v45 = vsub.f32 %v3122_v27, %v1092_v60  ;;  %v1302_v30 = vsel %vm991_vm2, %v1234_v6, 0.0 }
 0x362   :  { %v3360_v1 = vpop.eup %2479  ;;  %v1116_v56 = vsel %vm956_vm1, %v1078_v28, 0.0  ;;  %v1009_v57 = vpop.xlane.xlu0 %1008  ;;  %v1241_v32 = vsel %vm956_vm1, %v3353_v17, 0.0 }
 0x363   :  { %2489 = vpow2.f32 %v1210_v4  ;;  %v1148_v18 = vsub.f32 %v3114_v19, %v1116_v56  ;;  %v1323_v10 = vsel %vm991_vm2, %v1241_v32, 0.0  ;;  %v1093_v21 = vsel %vm956_vm1, %v1009_v57, 0.0 }
 0x364   :  { %2491 = vpow2.f32 %v1156_v37  ;;  %1324 = vadd.xlane.f32.xlu1 %v1323_v10  ;;  %1303 = vadd.xlane.f32.xlu0 %v1302_v30  ;;  %v1236_v4 = vsel %vm956_vm1, %v3360_v1, 0.0  ;;  %v1160_v57 = vmul.f32 1.442695, %v1124_v45  ;;  %v1125_v32 = vsub.f32 %v2941_v31, %v1093_v21 }
 0x365   :  { %v3371_v48 = vpop.eup %2481  ;;  %v1208_v28 = vmul.f32 1.442695, %v1148_v18  ;;  %v1084_v14 = vpop.xlane.xlu1 %1083  ;;  %v1308_v18 = vsel %vm991_vm2, %v1236_v4, 0.0 }
 0x366   :  { %v3378_v56 = vpop.eup %2483  ;;  %v1118_v37 = vsel %vm956_vm1, %v1084_v14, 0.0  ;;  %v1243_v52 = vsel %vm956_vm1, %v3371_v48, 0.0 }
 0x367   :  { %2493 = vpow2.f32 %v1208_v28  ;;  %v1150_v60 = vsub.f32 %v3134_v39, %v1118_v37  ;;  %v1329_v6 = vsel %vm991_vm2, %v1243_v52, 0.0  ;;  %v1238_v28 = vsel %vm956_vm1, %v3378_v56, 0.0 }
 0x368   :  { %2495 = vpow2.f32 %v1158_v51  ;;  %1330 = vadd.xlane.f32.xlu1 %v1329_v6  ;;  %1309 = vadd.xlane.f32.xlu0 %v1308_v18  ;;  %v1162_v37 = vmul.f32 1.442695, %v1125_v32  ;;  %v1314_v52 = vsel %vm991_vm2, %v1238_v28, 0.0 }
 0x369   :  { %v3389_v10 = vpop.eup %2485  ;;  %v1212_v30 = vmul.f32 1.442695, %v1150_v60  ;;  %v1087_v14 = vpop.xlane.xlu1 %1086 }
 0x36a   :  { %v3394_v27 = vpop.eup %2487  ;;  %v1119_v51 = vsel %vm956_vm1, %v1087_v14, 0.0  ;;  %v1242_v21 = vsel %vm956_vm1, %v3389_v10, 0.0 }
 0x36b   :  { %2497 = vpow2.f32 %v1212_v30  ;;  %v1151_v45 = vsub.f32 %v3131_v33, %v1119_v51  ;;  %v1326_v4 = vsel %vm991_vm2, %v1242_v21, 0.0  ;;  %v1240_v18 = vsel %vm956_vm1, %v3394_v27, 0.0 }
 0x36c   :  { %2499 = vpow2.f32 %v1160_v57  ;;  %1327 = vadd.xlane.f32.xlu1 %v1326_v4  ;;  %1315 = vadd.xlane.f32.xlu0 %v1314_v52  ;;  %v1320_v32 = vsel %vm991_vm2, %v1240_v18, 0.0 }
 0x36d   :  { %v3404_v60 = vpop.eup %2489  ;;  %v1214_v6 = vmul.f32 1.442695, %v1151_v45 }
 0x36e   :  { %v3409_v14 = vpop.eup %2491  ;;  %v1245_v30 = vsel %vm956_vm1, %v3404_v60, 0.0 }
 0x36f   :  { %2501 = vpow2.f32 %v1214_v6  ;;  %v1335_v57 = vsel %vm991_vm2, %v1245_v30, 0.0  ;;  %v1218_v51 = vsel %vm956_vm1, %v3409_v14, 0.0 }
 0x370   :  { %2503 = vpow2.f32 %v1162_v37  ;;  %1336 = vadd.xlane.f32.xlu1 %v1335_v57  ;;  %1321 = vadd.xlane.f32.xlu0 %v1320_v32  ;;  %v1254_v37 = vsel %vm991_vm2, %v1218_v51, 0.0 }
 0x371   :  { %v3416_v28 = vpop.eup %2493 }
 0x372   :  { %v3421_v21 = vpop.eup %2495  ;;  %v1244_v45 = vsel %vm956_vm1, %v3416_v28, 0.0 }
 0x373   :  { %v1332_v4 = vsel %vm991_vm2, %v1244_v45, 0.0  ;;  %v1219_v6 = vsel %vm956_vm1, %v3421_v21, 0.0 }
 0x374   :  { %1333 = vadd.xlane.f32.xlu1 %v1332_v4  ;;  %1255 = vadd.xlane.f32.xlu0 %v1254_v37  ;;  %v1257_v32 = vsel %vm991_vm2, %v1219_v6, 0.0 }
 0x375   :  { %v3428_v52 = vpop.eup %2497 }
 0x376   :  { %v3433_v18 = vpop.eup %2499  ;;  %v1246_v30 = vsel %vm956_vm1, %v3428_v52, 0.0 }
 0x377   :  { %v1338_v57 = vsel %vm991_vm2, %v1246_v30, 0.0  ;;  %v1220_v51 = vsel %vm956_vm1, %v3433_v18, 0.0 }
 0x378   :  { %1339 = vadd.xlane.f32.xlu1 %v1338_v57  ;;  %1258 = vadd.xlane.f32.xlu0 %v1257_v32  ;;  %v1260_v30 = vsel %vm991_vm2, %v1220_v51, 0.0 }
 0x379   :  { %v3440_v45 = vpop.eup %2501 }
 0x37a   :  { %v3445_v4 = vpop.eup %2503  ;;  %v1247_v37 = vsel %vm956_vm1, %v3440_v45, 0.0 }
 0x37b   :  { %v1341_v31 = vsel %vm991_vm2, %v1247_v37, 0.0  ;;  %v1221_v6 = vsel %vm956_vm1, %v3445_v4, 0.0 }
 0x37c   :  { %1342 = vadd.xlane.f32.xlu1 %v1341_v31  ;;  %1261 = vadd.xlane.f32.xlu0 %v1260_v30  ;;  %v1263_v57 = vsel %vm991_vm2, %v1221_v6, 0.0 }
 0x380   :  { %1264 = vadd.xlane.f32.xlu0 %v1263_v57 }
 0x3c9   :  { %v1271_v32 = vpop.xlane.xlu1 %1270 }
 0x3cd   :  { %v1277_v39 = vpop.xlane.xlu1 %1276 }
 0x3d1   :  { %v1253_v33 = vpop.xlane.xlu0 %1252 }
 0x3d2   :  { %2505 = vrcp.f32 %v1253_v33 }
 0x3d5   :  { %v1283_v19 = vpop.xlane.xlu1 %1282  ;;  %v1250_v58 = vpop.xlane.xlu0 %1249 }
 0x3d6   :  { %2507 = vrcp.f32 %v1250_v58 }
 0x3d7   :  { %2509 = vrcp.f32 %v1271_v32 }
 0x3d9   :  { %v1289_v37 = vpop.xlane.xlu1 %1288  ;;  %v1268_v31 = vpop.xlane.xlu0 %1267 }
 0x3da   :  { %2511 = vrcp.f32 %v1268_v31 }
 0x3db   :  { %2513 = vrcp.f32 %v1277_v39 }
 0x3dc   :  { %v2506_v30 = vpop.eup %2505 }
 0x3dd   :  { %v1295_v51 = vpop.xlane.xlu1 %1294  ;;  %v1274_v50 = vpop.xlane.xlu0 %1273  ;;  %v1347_v6 = vmul.f32 %v2506_v30, %v3217_v55 }
 0x3de   :  { %2515 = vrcp.f32 %v1274_v50 }
 0x3df   :  { %2517 = vrcp.f32 %v1283_v19  ;;  %v1409_v19 = vsel %vm956_vm1, %v1347_v6, %v3217_v55 }
 0x3e0   :  { %v2508_v47 = vpop.eup %2507 }
 0x3e1   :  { %v1301_v57 = vpop.xlane.xlu1 %1300  ;;  %v2510_v38 = vpop.eup %2509  ;;  %v1345_v33 = vmul.f32 %v2508_v47, %v3213_v46 }
 0x3e2   :  { %v1280_v35 = vpop.xlane.xlu0 %1279  ;;  %v1359_v32 = vmul.f32 %v2510_v38, %v3189_v62 }
 0x3e3   :  { %2519 = vrcp.f32 %v1280_v35  ;;  %v1408_v58 = vsel %vm956_vm1, %v1345_v33, %v3213_v46 }
 0x3e4   :  { %2521 = vrcp.f32 %v1289_v37  ;;  %v2512_v39 = vpop.eup %2511  ;;  %2320 = vmatprep.mubr.msk.f32.mxu0 %vm991_vm2, %v1408_v58  ;;  %v1415_v55 = vsel %vm956_vm1, %v1359_v32, %v3189_v62 }
 0x3e5   :  { %v1307_v50 = vpop.xlane.xlu1 %1306  ;;  %v2514_v31 = vpop.eup %2513  ;;  %2321 = vmatmul.mubr.msk.f32.vlgmr.msra.gmra.mrb[64].mxu0 %vm991_vm2, %v1409_v19  ;;  %v1357_v35 = vmul.f32 %v2512_v39, %v3234_v15 }
 0x3e6   :  { %v1286_v47 = vpop.xlane.xlu0 %1285  ;;  %v1363_v30 = vmul.f32 %v2514_v31, %v3201_v16 }
 0x3e7   :  { %2523 = vrcp.f32 %v1286_v47  ;;  %v1414_v46 = vsel %vm956_vm1, %v1357_v35, %v3234_v15 }
 0x3e8   :  { %2525 = vrcp.f32 %v1295_v51  ;;  %v2516_v38 = vpop.eup %2515  ;;  %2329 = vmatprep.mubr.msk.f32.mxu1 %vm991_vm2, %v1414_v46  ;;  %v1417_v62 = vsel %vm956_vm1, %v1363_v30, %v3201_v16 }
 0x3e9   :  { %v1313_v37 = vpop.xlane.xlu1 %1312  ;;  %v2518_v6 = vpop.eup %2517  ;;  %2330 = vmatmul.mubr.msk.f32.vlgmr.msra.gmra.mrb[32].mxu1 %vm991_vm2, %v1415_v55  ;;  %v1361_v51 = vmul.f32 %v2516_v38, %v3252_v53 }
 0x3ea   :  { %v1292_v33 = vpop.xlane.xlu0 %1291  ;;  %v1367_v32 = vmul.f32 %v2518_v6, %v3227_v2 }
 0x3eb   :  { %2527 = vrcp.f32 %v1292_v33  ;;  %v1416_v15 = vsel %vm956_vm1, %v1361_v51, %v3252_v53 }
 0x3ec   :  { %2529 = vrcp.f32 %v1301_v57  ;;  %2332 = vmatprep.mubr.msk.f32.mxu1 %vm991_vm2, %v1416_v15  ;;  %v1419_v16 = vsel %vm956_vm1, %v1367_v32, %v3227_v2 }
 0x3ed   :  { %v2520_v58 = vpop.eup %2519  ;;  %v1319_v39 = vpop.xlane.xlu1 %1318  ;;  %2333 = vmatmul.mubr.msk.f32.gmra.mrb[34].mxu1 %vm991_vm2, %v1417_v62 }
 0x3ee   :  { %v2522_v19 = vpop.eup %2521  ;;  %v1298_v31 = vpop.xlane.xlu0 %1297  ;;  %v1365_v57 = vmul.f32 %v2520_v58, %v3270_v25 }
 0x3ef   :  { %2531 = vrcp.f32 %v1298_v31  ;;  %v1371_v46 = vmul.f32 %v2522_v19, %v3245_v42 }
 0x3f0   :  { %2533 = vrcp.f32 %v1307_v50  ;;  %v1418_v53 = vsel %vm956_vm1, %v1365_v57, %v3270_v25 }
 0x3f1   :  { %v2524_v47 = vpop.eup %2523  ;;  %2335 = vmatprep.mubr.msk.f32.mxu1 %vm991_vm2, %v1418_v53  ;;  %v1325_v35 = vpop.xlane.xlu1 %1324  ;;  %v1421_v2 = vsel %vm956_vm1, %v1371_v46, %v3245_v42 }
 0x3f2   :  { %v2526_v38 = vpop.eup %2525  ;;  %2336 = vmatmul.mubr.msk.f32.gmra.mrb[36].mxu1 %vm991_vm2, %v1419_v16  ;;  %v1304_v55 = vpop.xlane.xlu0 %1303  ;;  %v1369_v50 = vmul.f32 %v2524_v47, %v3288_v0 }
 0x3f3   :  { %2535 = vrcp.f32 %v1304_v55  ;;  %v1375_v33 = vmul.f32 %v2526_v38, %v3263_v8 }
 0x3f4   :  { %2537 = vrcp.f32 %v1313_v37  ;;  %v1420_v25 = vsel %vm956_vm1, %v1369_v50, %v3288_v0 }
 0x3f5   :  { %v2528_v30 = vpop.eup %2527  ;;  %2338 = vmatprep.mubr.msk.f32.mxu1 %vm991_vm2, %v1420_v25  ;;  %v1331_v6 = vpop.xlane.xlu1 %1330  ;;  %v1423_v42 = vsel %vm956_vm1, %v1375_v33, %v3263_v8 }
 0x3f6   :  { %v2530_v51 = vpop.eup %2529  ;;  %2339 = vmatmul.mubr.msk.f32.gmra.mrb[38].mxu1 %vm991_vm2, %v1421_v2  ;;  %v1310_v15 = vpop.xlane.xlu0 %1309  ;;  %v1373_v37 = vmul.f32 %v2528_v30, %v3306_v43 }
 0x3f7   :  { %2539 = vrcp.f32 %v1310_v15  ;;  %v1379_v32 = vmul.f32 %v2530_v51, %v3281_v23 }
 0x3f8   :  { %2541 = vrcp.f32 %v1319_v39  ;;  %v1422_v0 = vsel %vm956_vm1, %v1373_v37, %v3306_v43 }
 0x3f9   :  { %v2532_v58 = vpop.eup %2531  ;;  %2341 = vmatprep.mubr.msk.f32.mxu1 %vm991_vm2, %v1422_v0  ;;  %v1328_v62 = vpop.xlane.xlu1 %1327  ;;  %v1425_v8 = vsel %vm956_vm1, %v1379_v32, %v3281_v23 }
 0x3fa   :  { %v2534_v19 = vpop.eup %2533  ;;  %2342 = vmatmul.mubr.msk.f32.gmra.mrb[40].mxu1 %vm991_vm2, %v1423_v42  ;;  %v1316_v31 = vpop.xlane.xlu0 %1315  ;;  %v1377_v39 = vmul.f32 %v2532_v58, %v3324_v12 }
 0x3fb   :  { %2543 = vrcp.f32 %v1316_v31  ;;  %v1383_v47 = vmul.f32 %v2534_v19, %v3299_v29 }
 0x3fc   :  { %2545 = vrcp.f32 %v1325_v35  ;;  %v1424_v43 = vsel %vm956_vm1, %v1377_v39, %v3324_v12 }
 0x3fd   :  { %v2536_v57 = vpop.eup %2535  ;;  %2547 = vrcp.f32 %v1328_v62  ;;  %2344 = vmatprep.mubr.msk.f32.mxu1 %vm991_vm2, %v1424_v43  ;;  %v1337_v53 = vpop.xlane.xlu1 %1336  ;;  %v1427_v23 = vsel %vm956_vm1, %v1383_v47, %v3299_v29 }
 0x3fe   :  { %v2538_v16 = vpop.eup %2537  ;;  %2345 = vmatmul.mubr.msk.f32.gmra.mrb[42].mxu1 %vm991_vm2, %v1425_v8  ;;  %v1322_v46 = vpop.xlane.xlu0 %1321  ;;  %v1381_v35 = vmul.f32 %v2536_v57, %v3342_v63 }
 0x3ff   :  { %2549 = vrcp.f32 %v1322_v46  ;;  %v1387_v50 = vmul.f32 %v2538_v16, %v3317_v9 }
 0x400   :  { %2551 = vrcp.f32 %v1331_v6  ;;  %v1426_v12 = vsel %vm956_vm1, %v1381_v35, %v3342_v63 }
 0x401   :  { %v2540_v38 = vpop.eup %2539  ;;  %2347 = vmatprep.mubr.msk.f32.mxu1 %vm991_vm2, %v1426_v12  ;;  %v1334_v55 = vpop.xlane.xlu1 %1333  ;;  %v1429_v29 = vsel %vm956_vm1, %v1387_v50, %v3317_v9 }
 0x402   :  { %v2542_v25 = vpop.eup %2541  ;;  %2553 = vrcp.f32 %v1334_v55  ;;  %2348 = vmatmul.mubr.msk.f32.gmra.mrb[44].mxu1 %vm991_vm2, %v1427_v23  ;;  %v1256_v30 = vpop.xlane.xlu0 %1255  ;;  %v1385_v6 = vmul.f32 %v2540_v38, %v3360_v1 }
 0x403   :  { %2555 = vrcp.f32 %v1256_v30  ;;  %v1391_v51 = vmul.f32 %v2542_v25, %v3335_v7 }
 0x404   :  { %2557 = vrcp.f32 %v1337_v53  ;;  %v1428_v63 = vsel %vm956_vm1, %v1385_v6, %v3360_v1 }
 0x405   :  { %v2544_v2 = vpop.eup %2543  ;;  %2350 = vmatprep.mubr.msk.f32.mxu1 %vm991_vm2, %v1428_v63  ;;  %v1340_v33 = vpop.xlane.xlu1 %1339  ;;  %v1431_v9 = vsel %vm956_vm1, %v1391_v51, %v3335_v7 }
 0x406   :  { %v2546_v15 = vpop.eup %2545  ;;  %2559 = vrcp.f32 %v1340_v33  ;;  %2351 = vmatmul.mubr.msk.f32.gmra.mrb[46].mxu1 %vm991_vm2, %v1429_v29  ;;  %v1259_v37 = vpop.xlane.xlu0 %1258  ;;  %v1389_v0 = vmul.f32 %v2544_v2, %v3378_v56 }
 0x407   :  { %v2548_v58 = vpop.eup %2547  ;;  %2561 = vrcp.f32 %v1259_v37  ;;  %v1395_v32 = vmul.f32 %v2546_v15, %v3353_v17 }
 0x408   :  { %v1430_v1 = vsel %vm956_vm1, %v1389_v0, %v3378_v56  ;;  %v1397_v43 = vmul.f32 %v2548_v58, %v3389_v10 }
 0x409   :  { %v2550_v62 = vpop.eup %2549  ;;  %2353 = vmatprep.mubr.msk.f32.mxu1 %vm991_vm2, %v1430_v1  ;;  %v1343_v42 = vpop.xlane.xlu1 %1342  ;;  %v1433_v7 = vsel %vm956_vm1, %v1395_v32, %v3353_v17 }
 0x40a   :  { %v2552_v19 = vpop.eup %2551  ;;  %2563 = vrcp.f32 %v1343_v42  ;;  %2354 = vmatmul.mubr.msk.f32.gmra.mrb[48].mxu1 %vm991_vm2, %v1431_v9  ;;  %v1262_v31 = vpop.xlane.xlu0 %1261  ;;  %v1393_v39 = vmul.f32 %v2550_v62, %v3394_v27  ;;  %v1434_v46 = vsel %vm956_vm1, %v1397_v43, %v3389_v10 }
 0x40b   :  { %2565 = vrcp.f32 %v1262_v31  ;;  %v1399_v8 = vmul.f32 %v2552_v19, %v3371_v48 }
 0x40c   :  { %v2554_v56 = vpop.eup %2553  ;;  %v1432_v57 = vsel %vm956_vm1, %v1393_v39, %v3394_v27 }
 0x40d   :  { %v2556_v53 = vpop.eup %2555  ;;  %2356 = vmatprep.mubr.msk.f32.mxu1 %vm991_vm2, %v1432_v57  ;;  %v1401_v27 = vmul.f32 %v2554_v56, %v3416_v28  ;;  %v1435_v55 = vsel %vm956_vm1, %v1399_v8, %v3371_v48 }
 0x40e   :  { %v2558_v47 = vpop.eup %2557  ;;  %2357 = vmatmul.mubr.msk.f32.gmra.mrb[50].mxu1 %vm991_vm2, %v1433_v7  ;;  %v1265_v16 = vpop.xlane.xlu0 %1264  ;;  %v1349_v35 = vmul.f32 %v2556_v53, %v3409_v14 }
 0x40f   :  { %2567 = vrcp.f32 %v1265_v16  ;;  %2359 = vmatprep.mubr.msk.f32.mxu1 %vm991_vm2, %v1434_v46  ;;  %v1403_v10 = vmul.f32 %v2558_v47, %v3404_v60  ;;  %v1436_v23 = vsel %vm956_vm1, %v1401_v27, %v3416_v28 }
 0x410   :  { %v2560_v12 = vpop.eup %2559  ;;  %v1410_v17 = vsel %vm956_vm1, %v1349_v35, %v3409_v14 }
 0x411   :  { %v2562_v38 = vpop.eup %2561  ;;  %2323 = vmatprep.mubr.msk.f32.mxu0 %vm991_vm2, %v1410_v17  ;;  %v1405_v25 = vmul.f32 %v2560_v12, %v3428_v52  ;;  %v1437_v6 = vsel %vm956_vm1, %v1403_v10, %v3404_v60 }
 0x412   :  { %2360 = vmatmul.mubr.msk.f32.gmra.mrb[52].mxu1 %vm991_vm2, %v1435_v55  ;;  %v1351_v50 = vmul.f32 %v2562_v38, %v3421_v21 }
 0x413   :  { %2362 = vmatprep.mubr.msk.f32.mxu1 %vm991_vm2, %v1436_v23  ;;  %v1438_v63 = vsel %vm956_vm1, %v1405_v25, %v3428_v52  ;;  %v3823_v25 = vld [vmem:[#allocation3_spill] sm:$0xff] }
 0x414   :  { %v2564_v14 = vpop.eup %2563  ;;  %v1411_v30 = vsel %vm956_vm1, %v1351_v50, %v3421_v21 }
 0x415   :  { %v2566_v48 = vpop.eup %2565  ;;  %2324 = vmatmul.mubr.msk.f32.gmra.mrb[66].mxu0 %vm991_vm2, %v1411_v30  ;;  %v1407_v28 = vmul.f32 %v2564_v14, %v3440_v45  ;;  %v3824_v30 = vld [vmem:[#allocation4_spill] sm:$0xff] }
 0x416   :  { %2363 = vmatmul.mubr.msk.f32.gmra.mrb[54].mxu1 %vm991_vm2, %v1437_v6  ;;  %v1353_v2 = vmul.f32 %v2566_v48, %v3433_v18 }
 0x417   :  { %2365 = vmatprep.mubr.msk.f32.mxu1 %vm991_vm2, %v1438_v63  ;;  %v1439_v21 = vsel %vm956_vm1, %v1407_v28, %v3440_v45  ;;  %v3619_v45 = vld [vmem:[%s3789_s7] ss:$0 sm:$0xff]  ;;  %v3825_v63 = vld [vmem:[#allocation5_spill] sm:$0xff] }
 0x418   :  { %v1412_v60 = vsel %vm956_vm1, %v1353_v2, %v3433_v18  ;;  %v1448_v18 = vmul.f32 %v3619_v45, %v2956_v40  ;;  %v1447_v15 = vmul.f32 %v3619_v45, %v2930_v26  ;;  %v1454_v22 = vmul.f32 %v3619_v45, %v2946_v34 }
 0x419   :  { %v2568_v33 = vpop.eup %2567  ;;  %2326 = vmatprep.mubr.msk.f32.mxu0 %vm991_vm2, %v1412_v60  ;;  %v1453_v40 = vmul.f32 %v3619_v45, %v2949_v36  ;;  %v1456_v42 = vmul.f32 %v3619_v45, %v2959_v41  ;;  %v1455_v9 = vmul.f32 %v3619_v45, %v2965_v44  ;;  %v1458_v31 = vmul.f32 %v3619_v45, %v2973_v49  ;;  %v3826_v60 = vld [vmem:[#allocation6_spill] sm:$0xff] }
 0x41a   :  { %2366 = vmatmul.mubr.msk.f32.gmra.mrb[56].mxu1 %vm991_vm2, %v1439_v21  ;;  %v1355_v29 = vmul.f32 %v2568_v33, %v3445_v4  ;;  %v1457_v39 = vmul.f32 %v3619_v45, %v2982_v54  ;;  %v1460_v57 = vmul.f32 %v3619_v45, %v2993_v59  ;;  %v1459_v53 = vmul.f32 %v3619_v45, %v2996_v61 }
 0x41b   :  { %v1462_v47 = vmul.f32 %v3619_v45, %v3007_v3  ;;  %v1461_v16 = vmul.f32 %v3619_v45, %v3010_v5  ;;  %v1464_v27 = vmul.f32 %v3619_v45, %v3021_v11  ;;  %v1463_v12 = vmul.f32 %v3619_v45, %v3024_v13 }
 0x41c   :  { %v1413_v52 = vsel %vm956_vm1, %v1355_v29, %v3445_v4  ;;  %v1466_v55 = vmul.f32 %v3619_v45, %v3035_v20  ;;  %v1465_v10 = vmul.f32 %v3619_v45, %v3038_v24  ;;  %v1468_v14 = vmul.f32 %v3619_v45, %v3823_v25 }
 0x41d   :  { %2327 = vmatmul.mubr.msk.f32.gmra.mrb[68].mxu0 %vm991_vm2, %v1413_v52  ;;  %v1467_v48 = vmul.f32 %v3619_v45, %v3824_v30  ;;  %v1470_v2 = vmul.f32 %v3619_v45, %v3825_v63  ;;  %v1469_v33 = vmul.f32 %v3619_v45, %v3826_v60 }
 0x4b8   :  { %v2322_v51 = vpop.f32.mrb[64].mxu0 }
 0x4b9   :  { %v1807_v37 = vadd.f32 %v2322_v51, %v1448_v18  ;;  %v1647_v0 = vpop.f32.mrb[65].mxu0  ;;  %v3827_v51 = vld [vmem:[#allocation7_spill] sm:$0xff] }
 0x4ba   :  { %v1806_v58 = vadd.f32 %v1647_v0, %v1447_v15  ;;  %v1472_v15 = vmul.f32 %v3619_v45, %v3827_v51  ;;  %v3828_v0 = vld [vmem:[#allocation8_spill] sm:$0xff] }
 0x4bb   :  { %1839 = vst [vmem:[%s3790_s9 + $0x8] sm:$0xff] %v1807_v37 }
 0x4bc   :  { %1838 = vst [vmem:[%s3790_s9] sm:$0xff] %v1806_v58  ;;  %v2331_v4 = vpop.f32.mrb[32].mxu1  ;;  %v1471_v58 = vmul.f32 %v3619_v45, %v3828_v0 }
 0x4bd   :  { %v1813_v1 = vadd.f32 %v2331_v4, %v1454_v22  ;;  %v1677_v26 = vpop.f32.mrb[33].mxu1 }
 0x4be   :  { %v1812_v62 = vadd.f32 %v1677_v26, %v1453_v40 }
 0x4bf   :  { %1845 = vst [vmem:[%s3790_s9 + $0x38] sm:$0xff] %v1813_v1  ;;  %v3829_v1 = vld [vmem:[#allocation10_spill] sm:$0xff] }
 0x4c0   :  { %1844 = vst [vmem:[%s3790_s9 + $0x30] sm:$0xff] %v1812_v62  ;;  %v2334_v34 = vpop.f32.mrb[34].mxu1  ;;  %v1474_v26 = vmul.f32 %v3619_v45, %v3829_v1 }
 0x4c1   :  { %v1815_v32 = vadd.f32 %v2334_v34, %v1456_v42  ;;  %v1687_v36 = vpop.f32.mrb[35].mxu1  ;;  %v3830_v42 = vld [vmem:[#allocation12_spill] sm:$0xff] }
 0x4c2   :  { %v1814_v19 = vadd.f32 %v1687_v36, %v1455_v9  ;;  %v1473_v34 = vmul.f32 %v3619_v45, %v3830_v42 }
 0x4c3   :  { %1847 = vst [vmem:[%s3790_s9 + $0x48] sm:$0xff] %v1815_v32 }
 0x4c4   :  { %1846 = vst [vmem:[%s3790_s9 + $0x40] sm:$0xff] %v1814_v19  ;;  %v3831_v19 = vld [vmem:[#allocation11_spill] sm:$0xff] }
 0x4c5   :  { %v2337_v41 = vpop.f32.mrb[36].mxu1 }
 0x4c6   :  { %v1817_v43 = vadd.f32 %v2337_v41, %v1458_v31  ;;  %v1697_v44 = vpop.f32.mrb[37].mxu1  ;;  %v1450_v31 = vmul.f32 %v3619_v45, %v3831_v19 }
 0x4c7   :  { %v1816_v56 = vadd.f32 %v1697_v44, %v1457_v39  ;;  %v3832_v39 = vld [vmem:[#allocation9_spill] sm:$0xff]  ;;  %v3833_v44 = vld [vmem:[#allocation14_spill] sm:$0xff] }
 0x4c8   :  { %1849 = vst [vmem:[%s3790_s9 + $0x58] sm:$0xff] %v1817_v43  ;;  %v1449_v43 = vmul.f32 %v3619_v45, %v3832_v39 }
 0x4c9   :  { %1848 = vst [vmem:[%s3790_s9 + $0x50] sm:$0xff] %v1816_v56  ;;  %v2340_v49 = vpop.f32.mrb[38].mxu1  ;;  %v1476_v56 = vmul.f32 %v3619_v45, %v3833_v44 }
 0x4ca   :  { %v1819_v7 = vadd.f32 %v2340_v49, %v1460_v57  ;;  %v1707_v54 = vpop.f32.mrb[39].mxu1 }
 0x4cb   :  { %v1818_v8 = vadd.f32 %v1707_v54, %v1459_v53 }
 0x4cc   :  { %1851 = vst [vmem:[%s3790_s9 + $0x68] sm:$0xff] %v1819_v7  ;;  %v3834_v7 = vld [vmem:[#allocation13_spill] sm:$0xff] }
 0x4cd   :  { %1850 = vst [vmem:[%s3790_s9 + $0x60] sm:$0xff] %v1818_v8  ;;  %v2343_v59 = vpop.f32.mrb[40].mxu1  ;;  %v1475_v54 = vmul.f32 %v3619_v45, %v3834_v7 }
 0x4ce   :  { %v1821_v46 = vadd.f32 %v2343_v59, %v1462_v47  ;;  %v1717_v61 = vpop.f32.mrb[41].mxu1 }
 0x4cf   :  { %v1820_v35 = vadd.f32 %v1717_v61, %v1461_v16 }
 0x4d0   :  { %1853 = vst [vmem:[%s3790_s9 + $0x78] sm:$0xff] %v1821_v46  ;;  %v3835_v46 = vld [vmem:[#allocation16_spill] sm:$0xff] }
 0x4d1   :  { %1852 = vst [vmem:[%s3790_s9 + $0x70] sm:$0xff] %v1820_v35  ;;  %v2346_v3 = vpop.f32.mrb[42].mxu1  ;;  %v1478_v61 = vmul.f32 %v3619_v45, %v3835_v46 }
 0x4d2   :  { %v1823_v17 = vadd.f32 %v2346_v3, %v1464_v27  ;;  %v1727_v5 = vpop.f32.mrb[43].mxu1  ;;  %v3836_v27 = vld [vmem:[#allocation17_spill] sm:$0xff] }
 0x4d3   :  { %v1822_v38 = vadd.f32 %v1727_v5, %v1463_v12  ;;  %v1477_v3 = vmul.f32 %v3619_v45, %v3836_v27 }
 0x4d4   :  { %1855 = vst [vmem:[%s3790_s9 + $0x88] sm:$0xff] %v1823_v17 }
 0x4d5   :  { %1854 = vst [vmem:[%s3790_s9 + $0x80] sm:$0xff] %v1822_v38  ;;  %v2349_v11 = vpop.f32.mrb[44].mxu1  ;;  %v3837_v38 = vld [vmem:[#allocation2_spill] sm:$0xff] }
 0x4d6   :  { %v1825_v23 = vadd.f32 %v2349_v11, %v1466_v55  ;;  %v1737_v13 = vpop.f32.mrb[45].mxu1  ;;  %v1452_v55 = vmul.f32 %v3619_v45, %v3837_v38 }
 0x4d7   :  { %v1824_v50 = vadd.f32 %v1737_v13, %v1465_v10  ;;  %v3838_v10 = vld [vmem:[#allocation15_spill] sm:$0xff] }
 0x4d8   :  { %1857 = vst [vmem:[%s3790_s9 + $0x98] sm:$0xff] %v1825_v23  ;;  %v1451_v23 = vmul.f32 %v3619_v45, %v3838_v10 }
 0x4d9   :  { %1856 = vst [vmem:[%s3790_s9 + $0x90] sm:$0xff] %v1824_v50  ;;  %v2352_v20 = vpop.f32.mrb[46].mxu1 }
 0x4da   :  { %v1827_v6 = vadd.f32 %v2352_v20, %v1468_v14  ;;  %v1747_v24 = vpop.f32.mrb[47].mxu1 }
 0x4db   :  { %v1826_v28 = vadd.f32 %v1747_v24, %v1467_v48 }
 0x4dc   :  { %1859 = vst [vmem:[%s3790_s9 + $0xa8] sm:$0xff] %v1827_v6 }
 0x4dd   :  { %1858 = vst [vmem:[%s3790_s9 + $0xa0] sm:$0xff] %v1826_v28  ;;  %v2355_v21 = vpop.f32.mrb[48].mxu1 }
 0x4de   :  { %v1829_v29 = vadd.f32 %v2355_v21, %v1470_v2  ;;  %v1757_v52 = vpop.f32.mrb[49].mxu1 }
 0x4df   :  { %v1828_v18 = vadd.f32 %v1757_v52, %v1469_v33 }
 0x4e0   :  { %1861 = vst [vmem:[%s3790_s9 + $0xb8] sm:$0xff] %v1829_v29 }
 0x4e1   :  { %1860 = vst [vmem:[%s3790_s9 + $0xb0] sm:$0xff] %v1828_v18  ;;  %v2358_v37 = vpop.f32.mrb[50].mxu1 }
 0x4e2   :  { %v1831_v22 = vadd.f32 %v2358_v37, %v1472_v15  ;;  %v1767_v4 = vpop.f32.mrb[51].mxu1 }
 0x4e3   :  { %v1830_v40 = vadd.f32 %v1767_v4, %v1471_v58 }
 0x4e4   :  { %1863 = vst [vmem:[%s3790_s9 + $0xc8] sm:$0xff] %v1831_v22 }
 0x4e5   :  { %1862 = vst [vmem:[%s3790_s9 + $0xc0] sm:$0xff] %v1830_v40  ;;  %v2361_v62 = vpop.f32.mrb[52].mxu1 }
 0x4e6   :  { %v1833_v9 = vadd.f32 %v2361_v62, %v1474_v26  ;;  %v1777_v32 = vpop.f32.mrb[53].mxu1 }
 0x4e7   :  { %v1832_v36 = vadd.f32 %v1777_v32, %v1473_v34 }
 0x4e8   :  { %1865 = vst [vmem:[%s3790_s9 + $0xd8] sm:$0xff] %v1833_v9  ;;  %v2325_v41 = vpop.f32.mrb[66].mxu0 }
 0x4e9   :  { %1864 = vst [vmem:[%s3790_s9 + $0xd0] sm:$0xff] %v1832_v36  ;;  %v1809_v57 = vadd.f32 %v2325_v41, %v1450_v31  ;;  %v1657_v49 = vpop.f32.mrb[67].mxu0  ;;  %v2364_v53 = vpop.f32.mrb[54].mxu1 }
 0x4ea   :  { %v1808_v8 = vadd.f32 %v1657_v49, %v1449_v43  ;;  %v1835_v47 = vadd.f32 %v2364_v53, %v1476_v56  ;;  %v1787_v59 = vpop.f32.mrb[55].mxu1 }
 0x4eb   :  { %1841 = vst [vmem:[%s3790_s9 + $0x18] sm:$0xff] %v1809_v57  ;;  %v1834_v16 = vadd.f32 %v1787_v59, %v1475_v54 }
 0x4ec   :  { %1840 = vst [vmem:[%s3790_s9 + $0x10] sm:$0xff] %v1808_v8  ;;  %1867 = vst [vmem:[%s3790_s9 + $0xe8] sm:$0xff] %v1835_v47 }
 0x4ed   :  { %1866 = vst [vmem:[%s3790_s9 + $0xe0] sm:$0xff] %v1834_v16  ;;  %v2367_v35 = vpop.f32.mrb[56].mxu1 }
 0x4ee   :  { %v1837_v12 = vadd.f32 %v2367_v35, %v1478_v61  ;;  %v1797_v17 = vpop.f32.mrb[57].mxu1 }
 0x4ef   :  { %v1836_v5 = vadd.f32 %v1797_v17, %v1477_v3 }
 0x4f0   :  { %1869 = vst [vmem:[%s3790_s9 + $0xf8] sm:$0xff] %v1837_v12  ;;  %v2328_v11 = vpop.f32.mrb[68].mxu0 }
 0x4f1   :  { %1868 = vst [vmem:[%s3790_s9 + $0xf0] sm:$0xff] %v1836_v5  ;;  %v1811_v13 = vadd.f32 %v2328_v11, %v1452_v55  ;;  %v1667_v50 = vpop.f32.mrb[69].mxu0 }
 0x4f2   :  { %v1810_v25 = vadd.f32 %v1667_v50, %v1451_v23 }
 0x4f3   :  { %1843 = vst [vmem:[%s3790_s9 + $0x28] sm:$0xff] %v1811_v13 }
 0x4f4   :  { %1842 = vst [vmem:[%s3790_s9 + $0x20] sm:$0xff] %v1810_v25 }

</bundles_post_ra>
